<compile_context>
chip_gen: v5e
topology: v5e:2x2
jax: 0.10.0
libtpu: 0.0.40
codegen_flags: <defaults>
</compile_context>

<pallas_src>
import jax
import jax.numpy as jnp
from jax import lax
from jax.experimental import pallas as pl
from jax.experimental.pallas import tpu as pltpu


def basic_block_kernel(x_ref, w1_ref, b1_ref, w2_ref, b2_ref, out_ref):
    """One batch tile of the fused BasicBlock (conv-bn-relu-conv-bn-add-relu).

    x_ref  : (Tn, H, W, Cp) f32  channel-padded NHWC activations (no spatial pad)
    w*_ref : (9, Cp, Cp)     bf16 conv weights with BN scale folded in,
                              k = 3*kh + kw, then (ci, co)
    b*_ref : (1, Cp)         f32  folded BatchNorm bias (zeros in pad lanes)
    out_ref: (Tn, H, W, Cp)  f32
    """
    Tn, H, W, Cp = x_ref.shape
    M = Tn * H * W

    def conv3x3_bias(act, w_ref, b_ref):
        # act: (M, Cp) f32, rows m = (n*H + y)*W + x within this tile.
        # Scratch-free im2col: each tap is an XLU sublane roll of the flattened
        # image + boundary select, cast to bf16, then one (M,Cp)x(Cp,Cp) MXU dot
        # with f32 accumulation.  Boundary coords are rebuilt per conv so their
        # vreg live ranges don't span both convolutions.
        m_idx = lax.broadcasted_iota(jnp.int32, (M, Cp), 0)
        if (W & (W - 1)) == 0 and (H & (H - 1)) == 0:
            # shift/and instead of div/mod (all WideResNet stages are pow-2 H, W)
            xq = m_idx & (W - 1)
            yq = (m_idx >> (W.bit_length() - 1)) & (H - 1)
        else:
            xq = m_idx % W
            yq = (m_idx // W) % H

        acc = None
        for kh in range(3):
            dh = kh - 1
            for kw in range(3):
                dw = kw - 1
                s = dh * W + dw
                patch = act if s == 0 else pltpu.roll(act, shift=(-s) % M, axis=0)
                valid = None
                if dh != 0:
                    valid = (yq >= 1) if dh < 0 else (yq < H - 1)
                if dw != 0:
                    vx = (xq >= 1) if dw < 0 else (xq < W - 1)
                    valid = vx if valid is None else (valid & vx)
                if valid is not None:
                    patch = jnp.where(valid, patch, 0.0)
                d = jnp.dot(patch.astype(jnp.bfloat16), w_ref[kh * 3 + kw],
                            preferred_element_type=jnp.float32)
                acc = d if acc is None else acc + d
        return acc + b_ref[...]          # BN scale already folded into weights

    # conv1 + bn1 + relu
    h1 = jnp.maximum(conv3x3_bias(x_ref[...].reshape(M, Cp), w1_ref, b1_ref), 0.0)
    # conv2 + bn2 + residual + relu; residual re-read from VMEM at the add so x
    # isn't kept live in vregs across conv2's 9 matmuls.
    y = conv3x3_bias(h1, w2_ref, b2_ref) + x_ref[...].reshape(M, Cp)
    out_ref[...] = jnp.maximum(y, 0.0).reshape(Tn, H, W, Cp)


def _pick_tile_n(n, h, w, cp):
    """Images per grid step: aim for M_tile ~ 512 rows (fills the 256-wide MXU on
    v6e/v7x), keep the f32 in+out tiles within a small VMEM budget (double-
    buffered by the pipeline), and prefer >= 2 grid steps so DMA overlaps compute
    and v7x's two TensorCores both get work."""
    rows_per_img = h * w
    tile_bytes = rows_per_img * cp * 4
    vmem_budget = 8 << 20
    cap_vmem = max(1, vmem_budget // (4 * tile_bytes))        # in+out, 2x buffered
    cap_rows = max(1, 512 // rows_per_img)
    tile_n = max(1, min(n, cap_vmem, cap_rows))
    if n >= 2:
        tile_n = max(1, min(tile_n, n // 2))                  # keep >= 2 grid steps
    while n % tile_n:                                         # exact tiling
        tile_n -= 1
    return tile_n


@jax.jit
def basic_block_nhwc(x_pad, w1f, b1p, w2f, b2p):
    """Padded-NHWC fast path.  x_pad: (N, H, W, Cp) f32, Cp a multiple of 128 with
    zeros in pad lanes.  Chain consecutive BasicBlocks through this entry point so
    NCHW<->NHWC relayouts and channel pad/slice only happen at network boundaries."""
    N, H, W, Cp = x_pad.shape
    tile_n = _pick_tile_n(N, H, W, Cp)

    grid_spec = pltpu.PrefetchScalarGridSpec(
        num_scalar_prefetch=0,
        grid=(N // tile_n,),
        in_specs=[
            pl.BlockSpec((tile_n, H, W, Cp), lambda i: (i, 0, 0, 0)),
            pl.BlockSpec((9, Cp, Cp), lambda i: (0, 0, 0)),
            pl.BlockSpec((1, Cp), lambda i: (0, 0)),
            pl.BlockSpec((9, Cp, Cp), lambda i: (0, 0, 0)),
            pl.BlockSpec((1, Cp), lambda i: (0, 0)),
        ],
        out_specs=pl.BlockSpec((tile_n, H, W, Cp), lambda i: (i, 0, 0, 0)),
    )

    return pl.pallas_call(
        basic_block_kernel,
        out_shape=jax.ShapeDtypeStruct((N, H, W, Cp), jnp.float32),
        grid_spec=grid_spec,
        compiler_params=pltpu.CompilerParams(
            dimension_semantics=("parallel",)),   # batch tiles are independent
    )(x_pad, w1f, b1p, w2f, b2p)


def fold_bn_params(w1, s1, b1, w2, s2, b2):
    """Fold BN scale into the conv weights, pad channels to 128-lane multiples,
    pre-cast weights to bf16.  Do this once per network, not per forward call."""
    C = w1.shape[-1]
    Cp = ((C + 127) // 128) * 128

    def fold(w, scale):                                     # (3,3,C,C) HWIO
        wf = w * scale.reshape(1, 1, 1, C)                  # scale per out-channel
        wf = jnp.pad(wf, ((0, 0), (0, 0), (0, Cp - C), (0, Cp - C)))
        return wf.reshape(9, Cp, Cp).astype(jnp.bfloat16)

    def pad_bias(b):
        return jnp.pad(b.reshape(1, C), ((0, 0), (0, Cp - C)))

    return fold(w1, s1), pad_bias(b1), fold(w2, s2), pad_bias(b2)


@jax.jit
def basic_block_forward(x_nchw, w1, s1, b1, w2, s2, b2):
    """NCHW boundary wrapper matching the PyTorch module interface."""
    N, C, H, W = x_nchw.shape
    Cp = ((C + 127) // 128) * 128
    x = jnp.transpose(x_nchw, (0, 2, 3, 1))                 # -> NHWC
    x = jnp.pad(x, ((0, 0), (0, 0), (0, 0), (0, Cp - C)))
    w1f, b1p, w2f, b2p = fold_bn_params(w1, s1, b1, w2, s2, b2)
    out = basic_block_nhwc(x, w1f, b1p, w2f, b2p)
    return jnp.transpose(out[..., :C], (0, 3, 1, 2))        # strip pad, back to NCHW


def init_params(key, planes):
    ks = jax.random.split(key, 10)
    fan_in = planes * 9
    std = (2.0 / fan_in) ** 0.5
    eps = 1e-5

    w1 = std * jax.random.normal(ks[0], (3, 3, planes, planes), jnp.float32)
    w2 = std * jax.random.normal(ks[1], (3, 3, planes, planes), jnp.float32)

    def folded_bn(kg, kb, km, kv):
        gamma = 1.0 + 0.1 * jax.random.normal(kg, (planes,), jnp.float32)
        beta = 0.1 * jax.random.normal(kb, (planes,), jnp.float32)
        mean = 0.05 * jax.random.normal(km, (planes,), jnp.float32)
        var = 1.0 + 0.1 * jnp.abs(jax.random.normal(kv, (planes,), jnp.float32))
        scale = gamma / jnp.sqrt(var + eps)
        bias = beta - mean * scale
        return scale.reshape(1, planes), bias.reshape(1, planes)

    s1, b1 = folded_bn(ks[2], ks[3], ks[4], ks[5])
    s2, b2 = folded_bn(ks[6], ks[7], ks[8], ks[9])
    return w1, s1, b1, w2, s2, b2


def reference_forward(x_nchw, w1, s1, b1, w2, s2, b2):
    x = jnp.transpose(x_nchw, (0, 2, 3, 1))
    dn = lax.conv_dimension_numbers(x.shape, w1.shape, ('NHWC', 'HWIO', 'NHWC'))
    h = lax.conv_general_dilated(x, w1, (1, 1), 'SAME', dimension_numbers=dn,
                                 precision=lax.Precision.HIGHEST)
    h = jnp.maximum(h * s1 + b1, 0.0)
    h = lax.conv_general_dilated(h, w2, (1, 1), 'SAME', dimension_numbers=dn,
                                 precision=lax.Precision.HIGHEST)
    y = jnp.maximum(h * s2 + b2 + x, 0.0)
    return jnp.transpose(y, (0, 3, 1, 2))


if __name__ == "__main__":
    key = jax.random.PRNGKey(0)
    k_x, k_p = jax.random.split(key)

    N, C, H, W = 2, 32, 8, 8      # in_planes == planes, stride=1, no downsample
    x = jax.random.normal(k_x, (N, C, H, W), jnp.float32)
    params = init_params(k_p, C)

    out = jax.block_until_ready(basic_block_forward(x, *params))
    ref = reference_forward(x, *params)

    assert out.shape == (N, C, H, W)
    # bf16 MXU operands (f32 accumulation) vs the HIGHEST-precision f32 reference.
    assert jnp.allclose(out, ref, atol=5e-2, rtol=5e-2), "mismatch vs JAX reference"

    print("KERNEL_OK")
</pallas_src>

<mosaic_0001>
module attributes {stable_mosaic.version = 11 : i64} {
  func.func @basic_block_kernel(%arg0: i32, %arg1: memref<1x8x8x128xf32, #tpu.memory_space<vmem>>, %arg2: memref<9x128x128xbf16, #tpu.memory_space<vmem>>, %arg3: memref<1x128xf32, #tpu.memory_space<vmem>>, %arg4: memref<9x128x128xbf16, #tpu.memory_space<vmem>>, %arg5: memref<1x128xf32, #tpu.memory_space<vmem>>, %arg6: memref<1x8x8x128xf32, #tpu.memory_space<vmem>>) attributes {dimension_semantics = [#tpu.dimension_semantics<parallel>], iteration_bounds = array<i64: 2>, scalar_prefetch = 0 : i64, scratch_operands = 0 : i64, tpu.core_type = #tpu.core_type<tc>, window_params = [{transform_indices = @transform_0, window_bounds = array<i64: 1, 8, 8, 128>}, {pipeline_mode = #tpu.pipeline_mode<synchronous>, transform_indices = @transform_1, window_bounds = array<i64: 9, 128, 128>}, {pipeline_mode = #tpu.pipeline_mode<synchronous>, transform_indices = @transform_2, window_bounds = array<i64: 1, 128>}, {pipeline_mode = #tpu.pipeline_mode<synchronous>, transform_indices = @transform_3, window_bounds = array<i64: 9, 128, 128>}, {pipeline_mode = #tpu.pipeline_mode<synchronous>, transform_indices = @transform_4, window_bounds = array<i64: 1, 128>}, {transform_indices = @transform_5, window_bounds = array<i64: 1, 8, 8, 128>}]} {
    %c0 = arith.constant 0 : index
    %c0_0 = arith.constant 0 : index
    %c0_1 = arith.constant 0 : index
    %c0_2 = arith.constant 0 : index
    %0 = vector.load %arg1[%c0, %c0_0, %c0_1, %c0_2] : memref<1x8x8x128xf32, #tpu.memory_space<vmem>>, vector<1x8x8x128xf32>
    %1 = vector.shape_cast %0 : vector<1x8x8x128xf32> to vector<64x128xf32>
    %2 = tpu.iota {dimensions = array<i32: 0>} : vector<64x128xi32>
    %c7_i32 = arith.constant 7 : i32
    %3 = vector.broadcast %c7_i32 : i32 to vector<64x128xi32>
    %4 = arith.andi %2, %3 : vector<64x128xi32>
    %c3_i32 = arith.constant 3 : i32
    %5 = vector.broadcast %c3_i32 : i32 to vector<64x128xi32>
    %6 = arith.shrsi %2, %5 : vector<64x128xi32>
    %c7_i32_3 = arith.constant 7 : i32
    %7 = vector.broadcast %c7_i32_3 : i32 to vector<64x128xi32>
    %8 = arith.andi %6, %7 : vector<64x128xi32>
    %c9_i32 = arith.constant 9 : i32
    %9 = tpu.dynamic_rotate %1 by %c9_i32 dim 0 : vector<64x128xf32>, i32 -> vector<64x128xf32>
    %c1_i32 = arith.constant 1 : i32
    %10 = vector.broadcast %c1_i32 : i32 to vector<64x128xi32>
    %11 = arith.cmpi sge, %8, %10 : vector<64x128xi32>
    %c1_i32_4 = arith.constant 1 : i32
    %12 = vector.broadcast %c1_i32_4 : i32 to vector<64x128xi32>
    %13 = arith.cmpi sge, %4, %12 : vector<64x128xi32>
    %14 = arith.andi %11, %13 : vector<64x128xi1>
    %cst = arith.constant 0.000000e+00 : f32
    %15 = vector.broadcast %cst : f32 to vector<64x128xf32>
    %16 = arith.select %14, %9, %15 : vector<64x128xi1>, vector<64x128xf32>
    %17 = arith.truncf %16 : vector<64x128xf32> to vector<64x128xbf16>
    %c0_5 = arith.constant 0 : index
    %c0_6 = arith.constant 0 : index
    %c0_7 = arith.constant 0 : index
    %18 = vector.load %arg2[%c0_5, %c0_6, %c0_7] : memref<9x128x128xbf16, #tpu.memory_space<vmem>>, vector<1x128x128xbf16>
    %19 = vector.shape_cast %18 : vector<1x128x128xbf16> to vector<128x128xbf16>
    %cst_8 = arith.constant dense<0.000000e+00> : vector<64x128xf32>
    %20 = tpu.matmul %17, %19, %cst_8 {dimension_numbers = #tpu.dot_dimension_numbers<[1], [0], [0], [1], [0, 0, 1, 1], [], []>} : vector<64x128xbf16>, vector<128x128xbf16>, vector<64x128xf32> -> vector<64x128xf32>
    %c8_i32 = arith.constant 8 : i32
    %21 = tpu.dynamic_rotate %1 by %c8_i32 dim 0 : vector<64x128xf32>, i32 -> vector<64x128xf32>
    %c1_i32_9 = arith.constant 1 : i32
    %22 = vector.broadcast %c1_i32_9 : i32 to vector<64x128xi32>
    %23 = arith.cmpi sge, %8, %22 : vector<64x128xi32>
    %cst_10 = arith.constant 0.000000e+00 : f32
    %24 = vector.broadcast %cst_10 : f32 to vector<64x128xf32>
    %25 = arith.select %23, %21, %24 : vector<64x128xi1>, vector<64x128xf32>
    %26 = arith.truncf %25 : vector<64x128xf32> to vector<64x128xbf16>
    %c1 = arith.constant 1 : index
    %c0_11 = arith.constant 0 : index
    %c0_12 = arith.constant 0 : index
    %27 = vector.load %arg2[%c1, %c0_11, %c0_12] : memref<9x128x128xbf16, #tpu.memory_space<vmem>>, vector<1x128x128xbf16>
    %28 = vector.shape_cast %27 : vector<1x128x128xbf16> to vector<128x128xbf16>
    %cst_13 = arith.constant dense<0.000000e+00> : vector<64x128xf32>
    %29 = tpu.matmul %26, %28, %cst_13 {dimension_numbers = #tpu.dot_dimension_numbers<[1], [0], [0], [1], [0, 0, 1, 1], [], []>} : vector<64x128xbf16>, vector<128x128xbf16>, vector<64x128xf32> -> vector<64x128xf32>
    %30 = arith.addf %20, %29 : vector<64x128xf32>
    %c7_i32_14 = arith.constant 7 : i32
    %31 = tpu.dynamic_rotate %1 by %c7_i32_14 dim 0 : vector<64x128xf32>, i32 -> vector<64x128xf32>
    %c1_i32_15 = arith.constant 1 : i32
    %32 = vector.broadcast %c1_i32_15 : i32 to vector<64x128xi32>
    %33 = arith.cmpi sge, %8, %32 : vector<64x128xi32>
    %c7_i32_16 = arith.constant 7 : i32
    %34 = vector.broadcast %c7_i32_16 : i32 to vector<64x128xi32>
    %35 = arith.cmpi slt, %4, %34 : vector<64x128xi32>
    %36 = arith.andi %33, %35 : vector<64x128xi1>
    %cst_17 = arith.constant 0.000000e+00 : f32
    %37 = vector.broadcast %cst_17 : f32 to vector<64x128xf32>
    %38 = arith.select %36, %31, %37 : vector<64x128xi1>, vector<64x128xf32>
    %39 = arith.truncf %38 : vector<64x128xf32> to vector<64x128xbf16>
    %c2 = arith.constant 2 : index
    %c0_18 = arith.constant 0 : index
    %c0_19 = arith.constant 0 : index
    %40 = vector.load %arg2[%c2, %c0_18, %c0_19] : memref<9x128x128xbf16, #tpu.memory_space<vmem>>, vector<1x128x128xbf16>
    %41 = vector.shape_cast %40 : vector<1x128x128xbf16> to vector<128x128xbf16>
    %cst_20 = arith.constant dense<0.000000e+00> : vector<64x128xf32>
    %42 = tpu.matmul %39, %41, %cst_20 {dimension_numbers = #tpu.dot_dimension_numbers<[1], [0], [0], [1], [0, 0, 1, 1], [], []>} : vector<64x128xbf16>, vector<128x128xbf16>, vector<64x128xf32> -> vector<64x128xf32>
    %43 = arith.addf %30, %42 : vector<64x128xf32>
    %c1_i32_21 = arith.constant 1 : i32
    %44 = tpu.dynamic_rotate %1 by %c1_i32_21 dim 0 : vector<64x128xf32>, i32 -> vector<64x128xf32>
    %c1_i32_22 = arith.constant 1 : i32
    %45 = vector.broadcast %c1_i32_22 : i32 to vector<64x128xi32>
    %46 = arith.cmpi sge, %4, %45 : vector<64x128xi32>
    %cst_23 = arith.constant 0.000000e+00 : f32
    %47 = vector.broadcast %cst_23 : f32 to vector<64x128xf32>
    %48 = arith.select %46, %44, %47 : vector<64x128xi1>, vector<64x128xf32>
    %49 = arith.truncf %48 : vector<64x128xf32> to vector<64x128xbf16>
    %c3 = arith.constant 3 : index
    %c0_24 = arith.constant 0 : index
    %c0_25 = arith.constant 0 : index
    %50 = vector.load %arg2[%c3, %c0_24, %c0_25] : memref<9x128x128xbf16, #tpu.memory_space<vmem>>, vector<1x128x128xbf16>
    %51 = vector.shape_cast %50 : vector<1x128x128xbf16> to vector<128x128xbf16>
    %cst_26 = arith.constant dense<0.000000e+00> : vector<64x128xf32>
    %52 = tpu.matmul %49, %51, %cst_26 {dimension_numbers = #tpu.dot_dimension_numbers<[1], [0], [0], [1], [0, 0, 1, 1], [], []>} : vector<64x128xbf16>, vector<128x128xbf16>, vector<64x128xf32> -> vector<64x128xf32>
    %53 = arith.addf %43, %52 : vector<64x128xf32>
    %54 = arith.truncf %1 : vector<64x128xf32> to vector<64x128xbf16>
    %c4 = arith.constant 4 : index
    %c0_27 = arith.constant 0 : index
    %c0_28 = arith.constant 0 : index
    %55 = vector.load %arg2[%c4, %c0_27, %c0_28] : memref<9x128x128xbf16, #tpu.memory_space<vmem>>, vector<1x128x128xbf16>
    %56 = vector.shape_cast %55 : vector<1x128x128xbf16> to vector<128x128xbf16>
    %cst_29 = arith.constant dense<0.000000e+00> : vector<64x128xf32>
    %57 = tpu.matmul %54, %56, %cst_29 {dimension_numbers = #tpu.dot_dimension_numbers<[1], [0], [0], [1], [0, 0, 1, 1], [], []>} : vector<64x128xbf16>, vector<128x128xbf16>, vector<64x128xf32> -> vector<64x128xf32>
    %58 = arith.addf %53, %57 : vector<64x128xf32>
    %c63_i32 = arith.constant 63 : i32
    %59 = tpu.dynamic_rotate %1 by %c63_i32 dim 0 : vector<64x128xf32>, i32 -> vector<64x128xf32>
    %c7_i32_30 = arith.constant 7 : i32
    %60 = vector.broadcast %c7_i32_30 : i32 to vector<64x128xi32>
    %61 = arith.cmpi slt, %4, %60 : vector<64x128xi32>
    %cst_31 = arith.constant 0.000000e+00 : f32
    %62 = vector.broadcast %cst_31 : f32 to vector<64x128xf32>
    %63 = arith.select %61, %59, %62 : vector<64x128xi1>, vector<64x128xf32>
    %64 = arith.truncf %63 : vector<64x128xf32> to vector<64x128xbf16>
    %c5 = arith.constant 5 : index
    %c0_32 = arith.constant 0 : index
    %c0_33 = arith.constant 0 : index
    %65 = vector.load %arg2[%c5, %c0_32, %c0_33] : memref<9x128x128xbf16, #tpu.memory_space<vmem>>, vector<1x128x128xbf16>
    %66 = vector.shape_cast %65 : vector<1x128x128xbf16> to vector<128x128xbf16>
    %cst_34 = arith.constant dense<0.000000e+00> : vector<64x128xf32>
    %67 = tpu.matmul %64, %66, %cst_34 {dimension_numbers = #tpu.dot_dimension_numbers<[1], [0], [0], [1], [0, 0, 1, 1], [], []>} : vector<64x128xbf16>, vector<128x128xbf16>, vector<64x128xf32> -> vector<64x128xf32>
    %68 = arith.addf %58, %67 : vector<64x128xf32>
    %c57_i32 = arith.constant 57 : i32
    %69 = tpu.dynamic_rotate %1 by %c57_i32 dim 0 : vector<64x128xf32>, i32 -> vector<64x128xf32>
    %c7_i32_35 = arith.constant 7 : i32
    %70 = vector.broadcast %c7_i32_35 : i32 to vector<64x128xi32>
    %71 = arith.cmpi slt, %8, %70 : vector<64x128xi32>
    %c1_i32_36 = arith.constant 1 : i32
    %72 = vector.broadcast %c1_i32_36 : i32 to vector<64x128xi32>
    %73 = arith.cmpi sge, %4, %72 : vector<64x128xi32>
    %74 = arith.andi %71, %73 : vector<64x128xi1>
    %cst_37 = arith.constant 0.000000e+00 : f32
    %75 = vector.broadcast %cst_37 : f32 to vector<64x128xf32>
    %76 = arith.select %74, %69, %75 : vector<64x128xi1>, vector<64x128xf32>
    %77 = arith.truncf %76 : vector<64x128xf32> to vector<64x128xbf16>
    %c6 = arith.constant 6 : index
    %c0_38 = arith.constant 0 : index
    %c0_39 = arith.constant 0 : index
    %78 = vector.load %arg2[%c6, %c0_38, %c0_39] : memref<9x128x128xbf16, #tpu.memory_space<vmem>>, vector<1x128x128xbf16>
    %79 = vector.shape_cast %78 : vector<1x128x128xbf16> to vector<128x128xbf16>
    %cst_40 = arith.constant dense<0.000000e+00> : vector<64x128xf32>
    %80 = tpu.matmul %77, %79, %cst_40 {dimension_numbers = #tpu.dot_dimension_numbers<[1], [0], [0], [1], [0, 0, 1, 1], [], []>} : vector<64x128xbf16>, vector<128x128xbf16>, vector<64x128xf32> -> vector<64x128xf32>
    %81 = arith.addf %68, %80 : vector<64x128xf32>
    %c56_i32 = arith.constant 56 : i32
    %82 = tpu.dynamic_rotate %1 by %c56_i32 dim 0 : vector<64x128xf32>, i32 -> vector<64x128xf32>
    %c7_i32_41 = arith.constant 7 : i32
    %83 = vector.broadcast %c7_i32_41 : i32 to vector<64x128xi32>
    %84 = arith.cmpi slt, %8, %83 : vector<64x128xi32>
    %cst_42 = arith.constant 0.000000e+00 : f32
    %85 = vector.broadcast %cst_42 : f32 to vector<64x128xf32>
    %86 = arith.select %84, %82, %85 : vector<64x128xi1>, vector<64x128xf32>
    %87 = arith.truncf %86 : vector<64x128xf32> to vector<64x128xbf16>
    %c7 = arith.constant 7 : index
    %c0_43 = arith.constant 0 : index
    %c0_44 = arith.constant 0 : index
    %88 = vector.load %arg2[%c7, %c0_43, %c0_44] : memref<9x128x128xbf16, #tpu.memory_space<vmem>>, vector<1x128x128xbf16>
    %89 = vector.shape_cast %88 : vector<1x128x128xbf16> to vector<128x128xbf16>
    %cst_45 = arith.constant dense<0.000000e+00> : vector<64x128xf32>
    %90 = tpu.matmul %87, %89, %cst_45 {dimension_numbers = #tpu.dot_dimension_numbers<[1], [0], [0], [1], [0, 0, 1, 1], [], []>} : vector<64x128xbf16>, vector<128x128xbf16>, vector<64x128xf32> -> vector<64x128xf32>
    %91 = arith.addf %81, %90 : vector<64x128xf32>
    %c55_i32 = arith.constant 55 : i32
    %92 = tpu.dynamic_rotate %1 by %c55_i32 dim 0 : vector<64x128xf32>, i32 -> vector<64x128xf32>
    %c7_i32_46 = arith.constant 7 : i32
    %93 = vector.broadcast %c7_i32_46 : i32 to vector<64x128xi32>
    %94 = arith.cmpi slt, %8, %93 : vector<64x128xi32>
    %c7_i32_47 = arith.constant 7 : i32
    %95 = vector.broadcast %c7_i32_47 : i32 to vector<64x128xi32>
    %96 = arith.cmpi slt, %4, %95 : vector<64x128xi32>
    %97 = arith.andi %94, %96 : vector<64x128xi1>
    %cst_48 = arith.constant 0.000000e+00 : f32
    %98 = vector.broadcast %cst_48 : f32 to vector<64x128xf32>
    %99 = arith.select %97, %92, %98 : vector<64x128xi1>, vector<64x128xf32>
    %100 = arith.truncf %99 : vector<64x128xf32> to vector<64x128xbf16>
    %c8 = arith.constant 8 : index
    %c0_49 = arith.constant 0 : index
    %c0_50 = arith.constant 0 : index
    %101 = vector.load %arg2[%c8, %c0_49, %c0_50] : memref<9x128x128xbf16, #tpu.memory_space<vmem>>, vector<1x128x128xbf16>
    %102 = vector.shape_cast %101 : vector<1x128x128xbf16> to vector<128x128xbf16>
    %cst_51 = arith.constant dense<0.000000e+00> : vector<64x128xf32>
    %103 = tpu.matmul %100, %102, %cst_51 {dimension_numbers = #tpu.dot_dimension_numbers<[1], [0], [0], [1], [0, 0, 1, 1], [], []>} : vector<64x128xbf16>, vector<128x128xbf16>, vector<64x128xf32> -> vector<64x128xf32>
    %104 = arith.addf %91, %103 : vector<64x128xf32>
    %c0_52 = arith.constant 0 : index
    %c0_53 = arith.constant 0 : index
    %105 = vector.load %arg3[%c0_52, %c0_53] : memref<1x128xf32, #tpu.memory_space<vmem>>, vector<1x128xf32>
    %106 = vector.broadcast %105 : vector<1x128xf32> to vector<64x128xf32>
    %107 = arith.addf %104, %106 : vector<64x128xf32>
    %cst_54 = arith.constant 0.000000e+00 : f32
    %108 = vector.broadcast %cst_54 : f32 to vector<64x128xf32>
    %109 = arith.maximumf %107, %108 : vector<64x128xf32>
    %110 = tpu.iota {dimensions = array<i32: 0>} : vector<64x128xi32>
    %c7_i32_55 = arith.constant 7 : i32
    %111 = vector.broadcast %c7_i32_55 : i32 to vector<64x128xi32>
    %112 = arith.andi %110, %111 : vector<64x128xi32>
    %c3_i32_56 = arith.constant 3 : i32
    %113 = vector.broadcast %c3_i32_56 : i32 to vector<64x128xi32>
    %114 = arith.shrsi %110, %113 : vector<64x128xi32>
    %c7_i32_57 = arith.constant 7 : i32
    %115 = vector.broadcast %c7_i32_57 : i32 to vector<64x128xi32>
    %116 = arith.andi %114, %115 : vector<64x128xi32>
    %c9_i32_58 = arith.constant 9 : i32
    %117 = tpu.dynamic_rotate %109 by %c9_i32_58 dim 0 : vector<64x128xf32>, i32 -> vector<64x128xf32>
    %c1_i32_59 = arith.constant 1 : i32
    %118 = vector.broadcast %c1_i32_59 : i32 to vector<64x128xi32>
    %119 = arith.cmpi sge, %116, %118 : vector<64x128xi32>
    %c1_i32_60 = arith.constant 1 : i32
    %120 = vector.broadcast %c1_i32_60 : i32 to vector<64x128xi32>
    %121 = arith.cmpi sge, %112, %120 : vector<64x128xi32>
    %122 = arith.andi %119, %121 : vector<64x128xi1>
    %cst_61 = arith.constant 0.000000e+00 : f32
    %123 = vector.broadcast %cst_61 : f32 to vector<64x128xf32>
    %124 = arith.select %122, %117, %123 : vector<64x128xi1>, vector<64x128xf32>
    %125 = arith.truncf %124 : vector<64x128xf32> to vector<64x128xbf16>
    %c0_62 = arith.constant 0 : index
    %c0_63 = arith.constant 0 : index
    %c0_64 = arith.constant 0 : index
    %126 = vector.load %arg4[%c0_62, %c0_63, %c0_64] : memref<9x128x128xbf16, #tpu.memory_space<vmem>>, vector<1x128x128xbf16>
    %127 = vector.shape_cast %126 : vector<1x128x128xbf16> to vector<128x128xbf16>
    %cst_65 = arith.constant dense<0.000000e+00> : vector<64x128xf32>
    %128 = tpu.matmul %125, %127, %cst_65 {dimension_numbers = #tpu.dot_dimension_numbers<[1], [0], [0], [1], [0, 0, 1, 1], [], []>} : vector<64x128xbf16>, vector<128x128xbf16>, vector<64x128xf32> -> vector<64x128xf32>
    %c8_i32_66 = arith.constant 8 : i32
    %129 = tpu.dynamic_rotate %109 by %c8_i32_66 dim 0 : vector<64x128xf32>, i32 -> vector<64x128xf32>
    %c1_i32_67 = arith.constant 1 : i32
    %130 = vector.broadcast %c1_i32_67 : i32 to vector<64x128xi32>
    %131 = arith.cmpi sge, %116, %130 : vector<64x128xi32>
    %cst_68 = arith.constant 0.000000e+00 : f32
    %132 = vector.broadcast %cst_68 : f32 to vector<64x128xf32>
    %133 = arith.select %131, %129, %132 : vector<64x128xi1>, vector<64x128xf32>
    %134 = arith.truncf %133 : vector<64x128xf32> to vector<64x128xbf16>
    %c1_69 = arith.constant 1 : index
    %c0_70 = arith.constant 0 : index
    %c0_71 = arith.constant 0 : index
    %135 = vector.load %arg4[%c1_69, %c0_70, %c0_71] : memref<9x128x128xbf16, #tpu.memory_space<vmem>>, vector<1x128x128xbf16>
    %136 = vector.shape_cast %135 : vector<1x128x128xbf16> to vector<128x128xbf16>
    %cst_72 = arith.constant dense<0.000000e+00> : vector<64x128xf32>
    %137 = tpu.matmul %134, %136, %cst_72 {dimension_numbers = #tpu.dot_dimension_numbers<[1], [0], [0], [1], [0, 0, 1, 1], [], []>} : vector<64x128xbf16>, vector<128x128xbf16>, vector<64x128xf32> -> vector<64x128xf32>
    %138 = arith.addf %128, %137 : vector<64x128xf32>
    %c7_i32_73 = arith.constant 7 : i32
    %139 = tpu.dynamic_rotate %109 by %c7_i32_73 dim 0 : vector<64x128xf32>, i32 -> vector<64x128xf32>
    %c1_i32_74 = arith.constant 1 : i32
    %140 = vector.broadcast %c1_i32_74 : i32 to vector<64x128xi32>
    %141 = arith.cmpi sge, %116, %140 : vector<64x128xi32>
    %c7_i32_75 = arith.constant 7 : i32
    %142 = vector.broadcast %c7_i32_75 : i32 to vector<64x128xi32>
    %143 = arith.cmpi slt, %112, %142 : vector<64x128xi32>
    %144 = arith.andi %141, %143 : vector<64x128xi1>
    %cst_76 = arith.constant 0.000000e+00 : f32
    %145 = vector.broadcast %cst_76 : f32 to vector<64x128xf32>
    %146 = arith.select %144, %139, %145 : vector<64x128xi1>, vector<64x128xf32>
    %147 = arith.truncf %146 : vector<64x128xf32> to vector<64x128xbf16>
    %c2_77 = arith.constant 2 : index
    %c0_78 = arith.constant 0 : index
    %c0_79 = arith.constant 0 : index
    %148 = vector.load %arg4[%c2_77, %c0_78, %c0_79] : memref<9x128x128xbf16, #tpu.memory_space<vmem>>, vector<1x128x128xbf16>
    %149 = vector.shape_cast %148 : vector<1x128x128xbf16> to vector<128x128xbf16>
    %cst_80 = arith.constant dense<0.000000e+00> : vector<64x128xf32>
    %150 = tpu.matmul %147, %149, %cst_80 {dimension_numbers = #tpu.dot_dimension_numbers<[1], [0], [0], [1], [0, 0, 1, 1], [], []>} : vector<64x128xbf16>, vector<128x128xbf16>, vector<64x128xf32> -> vector<64x128xf32>
    %151 = arith.addf %138, %150 : vector<64x128xf32>
    %c1_i32_81 = arith.constant 1 : i32
    %152 = tpu.dynamic_rotate %109 by %c1_i32_81 dim 0 : vector<64x128xf32>, i32 -> vector<64x128xf32>
    %c1_i32_82 = arith.constant 1 : i32
    %153 = vector.broadcast %c1_i32_82 : i32 to vector<64x128xi32>
    %154 = arith.cmpi sge, %112, %153 : vector<64x128xi32>
    %cst_83 = arith.constant 0.000000e+00 : f32
    %155 = vector.broadcast %cst_83 : f32 to vector<64x128xf32>
    %156 = arith.select %154, %152, %155 : vector<64x128xi1>, vector<64x128xf32>
    %157 = arith.truncf %156 : vector<64x128xf32> to vector<64x128xbf16>
    %c3_84 = arith.constant 3 : index
    %c0_85 = arith.constant 0 : index
    %c0_86 = arith.constant 0 : index
    %158 = vector.load %arg4[%c3_84, %c0_85, %c0_86] : memref<9x128x128xbf16, #tpu.memory_space<vmem>>, vector<1x128x128xbf16>
    %159 = vector.shape_cast %158 : vector<1x128x128xbf16> to vector<128x128xbf16>
    %cst_87 = arith.constant dense<0.000000e+00> : vector<64x128xf32>
    %160 = tpu.matmul %157, %159, %cst_87 {dimension_numbers = #tpu.dot_dimension_numbers<[1], [0], [0], [1], [0, 0, 1, 1], [], []>} : vector<64x128xbf16>, vector<128x128xbf16>, vector<64x128xf32> -> vector<64x128xf32>
    %161 = arith.addf %151, %160 : vector<64x128xf32>
    %162 = arith.truncf %109 : vector<64x128xf32> to vector<64x128xbf16>
    %c4_88 = arith.constant 4 : index
    %c0_89 = arith.constant 0 : index
    %c0_90 = arith.constant 0 : index
    %163 = vector.load %arg4[%c4_88, %c0_89, %c0_90] : memref<9x128x128xbf16, #tpu.memory_space<vmem>>, vector<1x128x128xbf16>
    %164 = vector.shape_cast %163 : vector<1x128x128xbf16> to vector<128x128xbf16>
    %cst_91 = arith.constant dense<0.000000e+00> : vector<64x128xf32>
    %165 = tpu.matmul %162, %164, %cst_91 {dimension_numbers = #tpu.dot_dimension_numbers<[1], [0], [0], [1], [0, 0, 1, 1], [], []>} : vector<64x128xbf16>, vector<128x128xbf16>, vector<64x128xf32> -> vector<64x128xf32>
    %166 = arith.addf %161, %165 : vector<64x128xf32>
    %c63_i32_92 = arith.constant 63 : i32
    %167 = tpu.dynamic_rotate %109 by %c63_i32_92 dim 0 : vector<64x128xf32>, i32 -> vector<64x128xf32>
    %c7_i32_93 = arith.constant 7 : i32
    %168 = vector.broadcast %c7_i32_93 : i32 to vector<64x128xi32>
    %169 = arith.cmpi slt, %112, %168 : vector<64x128xi32>
    %cst_94 = arith.constant 0.000000e+00 : f32
    %170 = vector.broadcast %cst_94 : f32 to vector<64x128xf32>
    %171 = arith.select %169, %167, %170 : vector<64x128xi1>, vector<64x128xf32>
    %172 = arith.truncf %171 : vector<64x128xf32> to vector<64x128xbf16>
    %c5_95 = arith.constant 5 : index
    %c0_96 = arith.constant 0 : index
    %c0_97 = arith.constant 0 : index
    %173 = vector.load %arg4[%c5_95, %c0_96, %c0_97] : memref<9x128x128xbf16, #tpu.memory_space<vmem>>, vector<1x128x128xbf16>
    %174 = vector.shape_cast %173 : vector<1x128x128xbf16> to vector<128x128xbf16>
    %cst_98 = arith.constant dense<0.000000e+00> : vector<64x128xf32>
    %175 = tpu.matmul %172, %174, %cst_98 {dimension_numbers = #tpu.dot_dimension_numbers<[1], [0], [0], [1], [0, 0, 1, 1], [], []>} : vector<64x128xbf16>, vector<128x128xbf16>, vector<64x128xf32> -> vector<64x128xf32>
    %176 = arith.addf %166, %175 : vector<64x128xf32>
    %c57_i32_99 = arith.constant 57 : i32
    %177 = tpu.dynamic_rotate %109 by %c57_i32_99 dim 0 : vector<64x128xf32>, i32 -> vector<64x128xf32>
    %c7_i32_100 = arith.constant 7 : i32
    %178 = vector.broadcast %c7_i32_100 : i32 to vector<64x128xi32>
    %179 = arith.cmpi slt, %116, %178 : vector<64x128xi32>
    %c1_i32_101 = arith.constant 1 : i32
    %180 = vector.broadcast %c1_i32_101 : i32 to vector<64x128xi32>
    %181 = arith.cmpi sge, %112, %180 : vector<64x128xi32>
    %182 = arith.andi %179, %181 : vector<64x128xi1>
    %cst_102 = arith.constant 0.000000e+00 : f32
    %183 = vector.broadcast %cst_102 : f32 to vector<64x128xf32>
    %184 = arith.select %182, %177, %183 : vector<64x128xi1>, vector<64x128xf32>
    %185 = arith.truncf %184 : vector<64x128xf32> to vector<64x128xbf16>
    %c6_103 = arith.constant 6 : index
    %c0_104 = arith.constant 0 : index
    %c0_105 = arith.constant 0 : index
    %186 = vector.load %arg4[%c6_103, %c0_104, %c0_105] : memref<9x128x128xbf16, #tpu.memory_space<vmem>>, vector<1x128x128xbf16>
    %187 = vector.shape_cast %186 : vector<1x128x128xbf16> to vector<128x128xbf16>
    %cst_106 = arith.constant dense<0.000000e+00> : vector<64x128xf32>
    %188 = tpu.matmul %185, %187, %cst_106 {dimension_numbers = #tpu.dot_dimension_numbers<[1], [0], [0], [1], [0, 0, 1, 1], [], []>} : vector<64x128xbf16>, vector<128x128xbf16>, vector<64x128xf32> -> vector<64x128xf32>
    %189 = arith.addf %176, %188 : vector<64x128xf32>
    %c56_i32_107 = arith.constant 56 : i32
    %190 = tpu.dynamic_rotate %109 by %c56_i32_107 dim 0 : vector<64x128xf32>, i32 -> vector<64x128xf32>
    %c7_i32_108 = arith.constant 7 : i32
    %191 = vector.broadcast %c7_i32_108 : i32 to vector<64x128xi32>
    %192 = arith.cmpi slt, %116, %191 : vector<64x128xi32>
    %cst_109 = arith.constant 0.000000e+00 : f32
    %193 = vector.broadcast %cst_109 : f32 to vector<64x128xf32>
    %194 = arith.select %192, %190, %193 : vector<64x128xi1>, vector<64x128xf32>
    %195 = arith.truncf %194 : vector<64x128xf32> to vector<64x128xbf16>
    %c7_110 = arith.constant 7 : index
    %c0_111 = arith.constant 0 : index
    %c0_112 = arith.constant 0 : index
    %196 = vector.load %arg4[%c7_110, %c0_111, %c0_112] : memref<9x128x128xbf16, #tpu.memory_space<vmem>>, vector<1x128x128xbf16>
    %197 = vector.shape_cast %196 : vector<1x128x128xbf16> to vector<128x128xbf16>
    %cst_113 = arith.constant dense<0.000000e+00> : vector<64x128xf32>
    %198 = tpu.matmul %195, %197, %cst_113 {dimension_numbers = #tpu.dot_dimension_numbers<[1], [0], [0], [1], [0, 0, 1, 1], [], []>} : vector<64x128xbf16>, vector<128x128xbf16>, vector<64x128xf32> -> vector<64x128xf32>
    %199 = arith.addf %189, %198 : vector<64x128xf32>
    %c55_i32_114 = arith.constant 55 : i32
    %200 = tpu.dynamic_rotate %109 by %c55_i32_114 dim 0 : vector<64x128xf32>, i32 -> vector<64x128xf32>
    %c7_i32_115 = arith.constant 7 : i32
    %201 = vector.broadcast %c7_i32_115 : i32 to vector<64x128xi32>
    %202 = arith.cmpi slt, %116, %201 : vector<64x128xi32>
    %c7_i32_116 = arith.constant 7 : i32
    %203 = vector.broadcast %c7_i32_116 : i32 to vector<64x128xi32>
    %204 = arith.cmpi slt, %112, %203 : vector<64x128xi32>
    %205 = arith.andi %202, %204 : vector<64x128xi1>
    %cst_117 = arith.constant 0.000000e+00 : f32
    %206 = vector.broadcast %cst_117 : f32 to vector<64x128xf32>
    %207 = arith.select %205, %200, %206 : vector<64x128xi1>, vector<64x128xf32>
    %208 = arith.truncf %207 : vector<64x128xf32> to vector<64x128xbf16>
    %c8_118 = arith.constant 8 : index
    %c0_119 = arith.constant 0 : index
    %c0_120 = arith.constant 0 : index
    %209 = vector.load %arg4[%c8_118, %c0_119, %c0_120] : memref<9x128x128xbf16, #tpu.memory_space<vmem>>, vector<1x128x128xbf16>
    %210 = vector.shape_cast %209 : vector<1x128x128xbf16> to vector<128x128xbf16>
    %cst_121 = arith.constant dense<0.000000e+00> : vector<64x128xf32>
    %211 = tpu.matmul %208, %210, %cst_121 {dimension_numbers = #tpu.dot_dimension_numbers<[1], [0], [0], [1], [0, 0, 1, 1], [], []>} : vector<64x128xbf16>, vector<128x128xbf16>, vector<64x128xf32> -> vector<64x128xf32>
    %212 = arith.addf %199, %211 : vector<64x128xf32>
    %c0_122 = arith.constant 0 : index
    %c0_123 = arith.constant 0 : index
    %213 = vector.load %arg5[%c0_122, %c0_123] : memref<1x128xf32, #tpu.memory_space<vmem>>, vector<1x128xf32>
    %214 = vector.broadcast %213 : vector<1x128xf32> to vector<64x128xf32>
    %215 = arith.addf %212, %214 : vector<64x128xf32>
    %c0_124 = arith.constant 0 : index
    %c0_125 = arith.constant 0 : index
    %c0_126 = arith.constant 0 : index
    %c0_127 = arith.constant 0 : index
    %216 = vector.load %arg1[%c0_124, %c0_125, %c0_126, %c0_127] : memref<1x8x8x128xf32, #tpu.memory_space<vmem>>, vector<1x8x8x128xf32>
    %217 = vector.shape_cast %216 : vector<1x8x8x128xf32> to vector<64x128xf32>
    %218 = arith.addf %215, %217 : vector<64x128xf32>
    %cst_128 = arith.constant 0.000000e+00 : f32
    %219 = vector.broadcast %cst_128 : f32 to vector<64x128xf32>
    %220 = arith.maximumf %218, %219 : vector<64x128xf32>
    %221 = vector.shape_cast %220 : vector<64x128xf32> to vector<1x8x8x128xf32>
    %c0_129 = arith.constant 0 : index
    %c0_130 = arith.constant 0 : index
    %c0_131 = arith.constant 0 : index
    %c0_132 = arith.constant 0 : index
    %222 = vector.load %arg6[%c0_129, %c0_130, %c0_131, %c0_132] : memref<1x8x8x128xf32, #tpu.memory_space<vmem>>, vector<1x8x8x128xf32>
    tpu.vector_store %arg6[%c0_129, %c0_130, %c0_131, %c0_132], %221 {strides = array<i32>} : memref<1x8x8x128xf32, #tpu.memory_space<vmem>>, vector<1x8x8x128xf32>,
    return
  }
  func.func @transform_0(%arg0: i32) -> (i32, i32, i32, i32) {
    %c0_i32 = arith.constant 0 : i32
    %c0_i32_0 = arith.constant 0 : i32
    %c0_i32_1 = arith.constant 0 : i32
    %c0_i32_2 = arith.constant 0 : i32
    return %arg0, %c0_i32, %c0_i32_0, %c0_i32_1 : i32, i32, i32, i32
  }
  func.func @transform_1(%arg0: i32) -> (i32, i32, i32) {
    %c0_i32 = arith.constant 0 : i32
    %c0_i32_0 = arith.constant 0 : i32
    %c0_i32_1 = arith.constant 0 : i32
    %c0_i32_2 = arith.constant 0 : i32
    return %c0_i32, %c0_i32_0, %c0_i32_1 : i32, i32, i32
  }
  func.func @transform_2(%arg0: i32) -> (i32, i32) {
    %c0_i32 = arith.constant 0 : i32
    %c0_i32_0 = arith.constant 0 : i32
    %c0_i32_1 = arith.constant 0 : i32
    return %c0_i32, %c0_i32_0 : i32, i32
  }
  func.func @transform_3(%arg0: i32) -> (i32, i32, i32) {
    %c0_i32 = arith.constant 0 : i32
    %c0_i32_0 = arith.constant 0 : i32
    %c0_i32_1 = arith.constant 0 : i32
    %c0_i32_2 = arith.constant 0 : i32
    return %c0_i32, %c0_i32_0, %c0_i32_1 : i32, i32, i32
  }
  func.func @transform_4(%arg0: i32) -> (i32, i32) {
    %c0_i32 = arith.constant 0 : i32
    %c0_i32_0 = arith.constant 0 : i32
    %c0_i32_1 = arith.constant 0 : i32
    return %c0_i32, %c0_i32_0 : i32, i32
  }
  func.func @transform_5(%arg0: i32) -> (i32, i32, i32, i32) {
    %c0_i32 = arith.constant 0 : i32
    %c0_i32_0 = arith.constant 0 : i32
    %c0_i32_1 = arith.constant 0 : i32
    %c0_i32_2 = arith.constant 0 : i32
    return %arg0, %c0_i32, %c0_i32_0, %c0_i32_1 : i32, i32, i32, i32
  }
}

</mosaic_0001>

<bundles_post_ra>
// kernel: basic_block_nhwc.1
= control target key start
LH: loop header
LB: loop body
LE: loop exit
PB: predicated region body
PF: predicated region fallthrough
CT: control target
= control target key end

     0   :  { %10 = vsyncpa [#allocation3], 0  ;;  %s5371_s0 = inlined_call_operand.hbm [shape: f32[2,8,8,128], index: 0, kind: input, shape index: {}]   ;;  %s5372_s1 = inlined_call_operand.hbm [shape: bf16[9,128,128], index: 1, kind: input, shape index: {}]   ;;  %s5373_s2 = inlined_call_operand.vmem [shape: f32[1,128], index: 2, kind: input, shape index: {}]   ;;  %s5374_s3 = inlined_call_operand.hbm [shape: bf16[9,128,128], index: 3, kind: input, shape index: {}]   ;;  %s5375_s4 = inlined_call_operand.vmem [shape: f32[1,128], index: 4, kind: input, shape index: {}]   ;;  %s5376_s5 = inlined_call_operand.hbm [shape: f32[2,8,8,128], index: 5, kind: output, shape index: {}]  }
   0x1   :  { %12 = vsyncpa [#allocation3 + $0x1], 0 }
   0x2   :  { %13 = vsyncpa [#allocation6], 0 }
   0x3   :  { %14 = vsyncpa [#allocation4], 0 }
   0x4   :  { %16 = vsyncpa [#allocation4 + $0x1], 0  ;;  %s3846_s18 = smov 0   ;;  %s3848_s19 = smov 0  }
   0x5   :  { %s3850_s20 = smov 0   ;;  %s3852_s21 = smov 0  }
   0x6 LB: > { %s3867_s22 = sadd.s32 4294967295, %s3806_s21   ;;  %s2615_s23 = sadd.s32 4294967294, %s3806_s21   ;;  %s3806_s21 = sphi %s3852_s21, %s5875_s21   ;;  %s3802_s20 = sphi %s3850_s20, %s5874_s20   ;;  %s3798_s19 = sphi %s3848_s19, %s5873_s19   ;;  %s3794_s18 = sphi %s3846_s18, %s5872_s18  }
   0x7   : > { %p42_p0 = scmp.ne.s32.totalorder %s3798_s19, %s3794_s18  ;;  %p43_p1 = scmp.eq.s32.totalorder %s3867_s22, 0 }
   0x8   : > { %p150_p2 = scmp.eq.s32.totalorder %s3867_s22, 1  ;;  %p156_p3 = scmp.eq.s32.totalorder %s2615_s23, 1 }
   0x9   : > { %p3876_p4 = por %p43_p1, %p42_p0  ;;  %p2616_p5 = scmp.ge.s32.totalorder %s3806_s21, 1 }
   0xa   : > { %p3881_p6 = por %p156_p3, %p42_p0  ;;  %p163_p7 = scmp.lt.s32.totalorder %s3806_s21, 3 }
   0xb   : > { %s174_s28 = sshll.u32 %s5372_s1, 4  ;;  %s3808_s30 = smov [#allocation5]   ;;  %s175_s28 = int_to_ptr.hbm [resolvable:$true] %s174_s28 }
   0xc   : > { %p3889_p8 = pnand %p2616_p5, %p163_p7  ;;  %s176_s6 = sshll.u32 %s3808_s30, 4  ;;  %s177_s6 = int_to_ptr.vmem [resolvable:$true] %s176_s6 }
   0xd   : > { %s191_s9 = sshll.u32 %s5374_s3, 4  ;;  %s3809_s10 = smov 64   ;;  %s192_s9 = int_to_ptr.hbm [resolvable:$true] %s191_s9 }
   0xe   : > { %p3575_p9 = pneg %p3889_p8  ;;  %s3810_s11 = smov 4  }
   0xf   : > { %s3811_s12 = smov [#allocation7]   ;;  %s3902_s14 = sadd.s32 1, %s3806_s21  }
  0x10   : > { %p3576_p10 = pnand %p3575_p9, %p43_p1  ;;  %s193_s13 = sshll.u32 %s3811_s12, 4  ;;  %s194_s13 = int_to_ptr.vmem [resolvable:$true] %s193_s13 }
  0x11   : > { %s29_s15 = sadd.s32 1, %s3802_s20  ;;  %s26_s16 = ssub.s32 %s3806_s21, %s3902_s14 }
  0x12   : > { %3578 = dma.hbm_to_vmem [thread:$0]  (!%p3576_p10), %s175_s28, 9216, %s177_s6, [#allocation6], %s3809_s10, %s3809_s10, %s3810_s11  }
  0x13   : > { %3581 = dma.hbm_to_vmem [thread:$0]  (!%p3576_p10), %s192_s9, 9216, %s194_s13, [#allocation6], %s3809_s10, %s3809_s10, %s3810_s11  }
  0x14   : > { %p36_p12 = scmp.ne.s32.totalorder %s3802_s20, %s3798_s19  ;;  %p27_p13 = scmp.eq.s32.totalorder %s26_s16, 0 }
  0x15   : > { %p37_p0 = scmp.eq.s32.totalorder %s3806_s21, 0  ;;  %p3592_p5 = scmp.lt.s32.totalorder %s3806_s21, 2 }
  0x16   : > { %p3912_p3 = por %p150_p2, %p36_p12  ;;  %s210_s26 = sand.u32 1, %s3802_s20  }
  0x17   : > { %s3918_s23 = scalar_select %p27_p13, %s3802_s20, %s29_s15  }
  0x18   : > { %p38_p7 = por %p37_p0, %p36_p12  ;;  %s2620_s27 = sshll.u32 %s210_s26, 6 }
  0x19   : > { %s3401_s28 = sshll.u32 %s3806_s21, 6  ;;  %s214_s8 = scalar_lea.vmem [#allocation2], %s2620_s27 }
  0x1a   : > { %s219_s7 = scalar_lea.hbm %s5371_s0, %s3401_s28  ;;  %s222_s9 = sshll.u32 %s214_s8, 4  ;;  %s223_s9 = int_to_ptr.vmem [resolvable:$true] %s222_s9 }
  0x1b   : > { %s220_s10 = sshll.u32 %s219_s7, 4  ;;  %p3925_p2 = pnand %p3592_p5, %p38_p7  ;;  %s221_s10 = int_to_ptr.hbm [resolvable:$true] %s220_s10 }
  0x1c   : > { %s211_s12 = scalar_lea.sflag [#allocation3], %s210_s26  ;;  %s3706_s13 = sshra.s32 %s221_s10, 4  ;;  %s3707_s13 = int_to_ptr.hbm [resolvable:$true] %s3706_s13 }
  0x1d   : > { %s3708_s15 = scalar_lea.hbm %s3707_s13, 64  ;;  %p3710_p10 = pneg %p3925_p2 }
  0x1e   : > { %p3709_p9 = scmp.ne.s32.totalorder %s3707_s13, %s3708_s15  ;;  %s3713_s28 = scalar_lea.hbm %s5371_s0, 128 }
  0x1f   : > { %p3714_p0 = scmp.lt.s32.totalorder %s3707_s13, %s5371_s0  ;;  %p3715_p5 = scmp.lt.s32.totalorder %s3713_s28, %s3708_s15 }
  0x20   : > { %p3711_p12 = pnand %p3710_p10, %p3709_p9 }
  0x21   : > { %p3716_p7 = por %p3715_p5, %p3714_p0 }
  0x22   : > { %p3712_p13 = pneg %p3711_p12 }
  0x24   : > { %p3717_p11 = pnand %p3716_p7, %p3712_p13 }
  0x26   : > { %3720 = shalt.err (!%p3717_p11)
}
  0x27   : > { %s3812_s26 = smov 128   ;;  %s3813_s7 = smov 8  }
  0x28   : > { %3585 = dma.hbm_to_vmem [thread:$0]  (!%p3925_p2), %s221_s10, 1024, %s223_s9, %s211_s12, %s3812_s26, %s3812_s26, %s3813_s7  }
  0x29   : > { %234 = sbr.rel (%p3889_p8) target bundleno = 702 (0x2be), region = 40 }
  0x2e   : > { %s3942_s8 = sand.u32 1, %s3798_s19  }
  0x2f   : > { %s2624_s13 = sshll.u32 %s3942_s8, 6  ;;  %s237_s15 = scalar_lea.sflag [#allocation3], %s3942_s8 }
  0x30   : > { %s3948_s16 = scalar_lea.vmem [#allocation2], %s2624_s13 }
  0x31   : > { %3781 = dma.done.wait (%p3876_p4), %s237_s15, 1024  }
  0x32   : > { %3783 = vsyncadd (%p3876_p4), %s237_s15, 4294966272 }
  0x33   : > { %3785 = dma.done.wait (%p43_p1), [#allocation6], 18432  }
  0x34   : > { %3787 = vsyncadd (%p43_p1), [#allocation6], 4294948864  ;;  %v3417_v0 = vld [vmem:[#allocation5 + $0x78] sm:$0xff]  ;;  %v286_v2 = vlaneseq  ;;  %v3416_v3 = vld [vmem:[#allocation5 + $0x70] sm:$0xff]  ;;  %v5531_v40 = vmov 0  ;;  %v5533_v41 = vmov 0 }
  0x35   : > { %v3409_v1 = vld [vmem:[#allocation5 + $0x38] sm:$0xff]  ;;  %3547 = vmatpush.bf16.msra.mxu2 %v3417_v0  ;;  %v3408_v4 = vld [vmem:[#allocation5 + $0x30] sm:$0xff]  ;;  %465 = vmatpush.bf16.msra.mxu0 %v3417_v0  ;;  %v3415_v6 = vld [vmem:[#allocation5 + $0x68] sm:$0xff]  ;;  %v5535_v45 = vmov 0  ;;  %v5538_v46 = vmov 0  ;;  %v5540_v47 = vmov 0 }
  0x36   : > { %3555 = vmatpush.bf16.msra.mxu3 %v3409_v1  ;;  %542 = vmatpush.bf16.msra.mxu1 %v3409_v1  ;;  %v3958_v5 = vshrl.u32 %v286_v2, 7  ;;  %v3407_v7 = vld [vmem:[#allocation5 + $0x28] sm:$0xff]  ;;  %v3414_v10 = vld [vmem:[#allocation5 + $0x60] sm:$0xff]  ;;  %v3413_v15 = vld [vmem:[#allocation5 + $0x58] sm:$0xff]  ;;  %v5543_v48 = vmov 0  ;;  %v5545_v55 = vmov 0 }
  0x37   : > { %v3406_v11 = vld [vmem:[#allocation5 + $0x20] sm:$0xff]  ;;  %v3405_v16 = vld [vmem:[#allocation5 + $0x18] sm:$0xff]  ;;  %v3412_v21 = vld [vmem:[#allocation5 + $0x50] sm:$0xff]  ;;  %v5548_v58 = vmov 0  ;;  %v5551_v62 = vmov 0  ;;  %s5292_s11 = scalar_lea.vmem [#allocation8], %s2624_s13 }
  0x38   : > { %v3961_v8 = vadd.s32 32, %v3958_v5  ;;  %v3964_v9 = vadd.s32 40, %v3958_v5  ;;  %v3969_v14 = vadd.s32 8, %v3958_v5  ;;  %v303_v17 = vshra.s32 %v3958_v5, 3  ;;  %v3404_v22 = vld [vmem:[#allocation5 + $0x10] sm:$0xff]  ;;  %v3979_v24 = vld [vmem:[%s3948_s16 + $0x18] sm:$0xff] }
  0x39   : > { %3548 = vmatpush.bf16.msra.mxu2 %v3416_v3  ;;  %466 = vmatpush.bf16.msra.mxu0 %v3416_v3  ;;  %v3982_v25 = vld [vmem:[%s3948_s16 + $0x20] sm:$0xff]  ;;  %v3985_v26 = vld [vmem:[%s3948_s16 + $0x10] sm:$0xff]  ;;  %vm5385_vm0 = vcmp.lt.s32.totalorder %v3958_v5, 1  ;;  %v3993_v29 = vld [vmem:[%s3948_s16 + $0x38] sm:$0xff]  ;;  %v5383_v32 = vand.u32 7, %v3958_v5  ;;  %v322_v38 = vrot.slane %v3979_v24, 7 }
  0x3a   : > { %3556 = vmatpush.bf16.msra.mxu3 %v3408_v4  ;;  %543 = vmatpush.bf16.msra.mxu1 %v3408_v4  ;;  %v307_v12 = vshra.s32 %v3961_v8, 3  ;;  %v308_v13 = vshra.s32 %v3964_v9, 3  ;;  %v304_v20 = vshra.s32 %v3969_v14, 3  ;;  %v5401_v23 = vand.u32 7, %v3961_v8  ;;  %v3990_v28 = vld [vmem:[%s3948_s16] sm:$0xff]  ;;  %v3998_v31 = vld [vmem:[%s3948_s16 + $0x30] sm:$0xff] }
  0x3b   : > { %v5397_v27 = vand.u32 7, %v3964_v9  ;;  %v3995_v30 = vand.u32 7, %v303_v17  ;;  %v5382_v34 = vand.u32 7, %v3969_v14  ;;  %v3411_v35 = vld [vmem:[#allocation5 + $0x48] sm:$0xff]  ;;  %v321_v37 = vrot.slane %v3985_v26, 7  ;;  %v3410_v51 = vld [vmem:[#allocation5 + $0x40] sm:$0xff] }
  0x3c   : > { %v3972_v18 = vand.u32 7, %v307_v12  ;;  %v3974_v19 = vand.u32 7, %v308_v13  ;;  %v4003_v33 = vand.u32 7, %v304_v20  ;;  %v3403_v36 = vld [vmem:[#allocation5 + $0x8] sm:$0xff]  ;;  %v323_v39 = vrot.slane %v3982_v25, 7  ;;  %v3402_v52 = vld [vmem:[#allocation5] sm:$0xff] }
  0x3d   : > { %3549 = vmatpush.bf16.msra.mxu2 %v3415_v6  ;;  %467 = vmatpush.bf16.msra.mxu0 %v3415_v6  ;;  %vm4011_vm3 = vcmp.ge.s32.totalorder %v5401_v23, 1  ;;  %vm4017_vm4 = vcmp.ge.s32.totalorder %v5397_v27, 1  ;;  %v319_v42 = vrot.slane %v3990_v28, 7  ;;  %v325_v43 = vrot.slane %v3998_v31, 7  ;;  %v3425_v60 = vld [vmem:[#allocation5 + $0xb8] sm:$0xff]  ;;  %v3424_v12 = vld [vmem:[#allocation5 + $0xb0] sm:$0xff] }
  0x3e   : > { %3557 = vmatpush.bf16.msra.mxu3 %v3407_v7  ;;  %544 = vmatpush.bf16.msra.mxu1 %v3407_v7  ;;  %5530 = vst [vmem:[#allocation12_spill] sm:$0xff] %v3974_v19  ;;  %vm5384_vm1 = vcmp.ge.s32.totalorder %v3972_v18, 1  ;;  %vm5377_vm2 = vcmp.ge.s32.totalorder %v3974_v19, 1  ;;  %v5532_v40 = vsel %vm4011_vm3, 4294967295, %v5531_v40  ;;  %v5534_v41 = vsel %vm4017_vm4, 4294967295, %v5533_v41  ;;  %v3433_v61 = vld [vmem:[#allocation5 + $0xf8] sm:$0xff] }
  0x3f   : > { %v326_v44 = vrot.slane %v3993_v29, 7  ;;  %vm4028_vm5 = vmpackc.low %vm5377_vm2, %vm5384_vm1  ;;  %vm5381_vm6 = vcmp.ge.s32.totalorder %v3995_v30, 1  ;;  %vm4035_vm7 = vcmp.ge.s32.totalorder %v5383_v32, 1  ;;  %vm5380_vm9 = vcmp.ge.s32.totalorder %v4003_v33, 1  ;;  %v3432_v13 = vld [vmem:[#allocation5 + $0xf0] sm:$0xff]  ;;  %v3430_v32 = vld [vmem:[#allocation5 + $0xe0] sm:$0xff] }
  0x40   : > { %v5536_v45 = vsel %vm4028_vm5, 4294967295, %v5535_v45  ;;  %v5539_v46 = vsel %vm4035_vm7, 4294967295, %v5538_v46  ;;  %vm4043_vm8 = vmand %vm5384_vm1, %vm4011_vm3  ;;  %vm4050_vm10 = vcmp.ge.s32.totalorder %v5382_v34, 1  ;;  %v4055_v49 = vadd.s32 48, %v3958_v5  ;;  %v3422_v34 = vld [vmem:[#allocation5 + $0xa0] sm:$0xff]  ;;  %v3429_v27 = vld [vmem:[#allocation5 + $0xd8] sm:$0xff] }
  0x41   : > { %3550 = vmatpush.bf16.msra.mxu2 %v3414_v10  ;;  %468 = vmatpush.bf16.msra.mxu0 %v3414_v10  ;;  %5537 = vst [vmem:[#allocation13_spill] sm:$0xff] %v5536_v45  ;;  %v5541_v47 = vsel %vm4043_vm8, 4294967295, %v5540_v47  ;;  %v5544_v48 = vsel %vm4050_vm10, 4294967295, %v5543_v48  ;;  %v4058_v50 = vadd.s32 56, %v3958_v5  ;;  %v4064_v53 = vsel %vm5385_vm0, %v322_v38, %v323_v39  ;;  %vm4076_vm11 = vmand %vm5377_vm2, %vm4017_vm4  ;;  %v3441_v10 = vld [vmem:[#allocation5 + $0x138] sm:$0xff]  ;;  %v3420_v45 = vld [vmem:[#allocation5 + $0x90] sm:$0xff] }
  0x42   : > { %3558 = vmatpush.bf16.msra.mxu3 %v3406_v11  ;;  %545 = vmatpush.bf16.msra.mxu1 %v3406_v11  ;;  %5542 = vst [vmem:[#allocation14_spill] sm:$0xff] %v5541_v47  ;;  %v4070_v54 = vsel %vm5385_vm0, %v321_v37, %v322_v38  ;;  %v5546_v55 = vsel %vm4076_vm11, 4294967295, %v5545_v55  ;;  %v4084_v56 = vsel %vm5385_vm0, %v325_v43, %v326_v44  ;;  %vm4096_vm12 = vmand %vm5381_vm6, %vm4035_vm7  ;;  %v4113_v63 = vadd.s32 16, %v3958_v5  ;;  %v3449_v11 = vld [vmem:[#allocation5 + $0x178] sm:$0xff]  ;;  %v3448_v38 = vld [vmem:[#allocation5 + $0x170] sm:$0xff]  ;;  %s3546_s12 = sshll.u32 %s3867_s22, 6 }
  0x43   : > { %5547 = vst [vmem:[#allocation15_spill] sm:$0xff] %v5546_v55  ;;  %v4090_v57 = vsel %vm5385_vm0, %v326_v44, %v319_v42  ;;  %v5549_v58 = vsel %vm4096_vm12, 4294967295, %v5548_v58  ;;  %v4102_v59 = vpack.c.bf16 %v3982_v25, %v3979_v24  ;;  %vm4108_vm13 = vmand %vm5380_vm9, %vm4050_vm10  ;;  %v4121_v0 = vpack.c.bf16 %v4064_v53, %v4070_v54  ;;  %v3423_v44 = vld [vmem:[#allocation5 + $0xa8] sm:$0xff]  ;;  %v3437_v47 = vld [vmem:[#allocation5 + $0x118] sm:$0xff]  ;;  %s2519_s30 = scalar_lea.hbm %s5376_s5, %s3546_s12  ;;  %s2520_s6 = sshll.u32 %s5292_s11, 4  ;;  %s2521_s6 = int_to_ptr.vmem [resolvable:$true] %s2520_s6 }
  0x44   : > { %5550 = vst [vmem:[#allocation16_spill] sm:$0xff] %v5549_v58  ;;  %v5552_v62 = vsel %vm4108_vm13, 4294967295, %v5551_v62  ;;  %vm5378_vm14 = vmpackc.low %vm4076_vm11, %vm4043_vm8  ;;  %v309_v1 = vshra.s32 %v4055_v49, 3  ;;  %v310_v2 = vshra.s32 %v4058_v50, 3  ;;  %v4126_v3 = vadd.s32 24, %v3958_v5  ;;  %v3445_v55 = vld [vmem:[#allocation5 + $0x158] sm:$0xff] }
  0x45   : > { %3551 = vmatpush.bf16.msra.mxu2 %v3413_v15  ;;  %469 = vmatpush.bf16.msra.mxu0 %v3413_v15  ;;  %5553 = vst [vmem:[#allocation17_spill] sm:$0xff] %v5552_v62  ;;  %vm4132_vm15 = vmpackc.low %vm5380_vm9, %vm5381_vm6  ;;  %v5554_v4 = vmov 0  ;;  %v4138_v6 = vpack.c.bf16 %v3990_v28, %v3993_v29  ;;  %v4142_v7 = vpack.c.bf16 %v4090_v57, %v4084_v56  ;;  %v305_v15 = vshra.s32 %v4113_v63, 3  ;;  %v3428_v58 = vld [vmem:[#allocation5 + $0xd0] sm:$0xff]  ;;  %v3426_v62 = vld [vmem:[#allocation5 + $0xc0] sm:$0xff]  ;;  %s2522_s26 = sshll.u32 %s2519_s30, 4  ;;  %s2523_s26 = int_to_ptr.hbm [resolvable:$true] %s2522_s26 }
  0x46   : > { %3559 = vmatpush.bf16.msra.mxu3 %v3405_v16  ;;  %546 = vmatpush.bf16.msra.mxu1 %v3405_v16  ;;  %v5555_v4 = vsel %vm4132_vm15, 4294967295, %v5554_v4  ;;  %vm5379_vm2 = vmpackc.low %vm4108_vm13, %vm4096_vm12  ;;  %v4158_v16 = vand.u32 7, %v309_v1  ;;  %v4160_v17 = vand.u32 7, %v310_v2  ;;  %v306_v20 = vshra.s32 %v4126_v3, 3  ;;  %s2508_s22 = scalar_lea.sflag [#allocation4], %s3942_s8  ;;  %s3750_s7 = sshra.s32 %s2523_s26, 4  ;;  %s3751_s7 = int_to_ptr.hbm [resolvable:$true] %s3750_s7 }
  0x47   : > { %5556 = vst [vmem:[#allocation18_spill] sm:$0xff] %v5555_v4  ;;  %v5394_v2 = vand.u32 7, %v4126_v3  ;;  %vm5573_vm0 = vcmp.lt.s32.totalorder %v3958_v5, 1  ;;  %v573_v4 = vrot.slane %v3985_v26, 1  ;;  %s3752_s13 = scalar_lea.hbm %s3751_s7, 64  ;;  %s3756_s29 = scalar_lea.hbm %s5376_s5, 128 }
  0x48   : > { %5557 = vst [vmem:[#allocation19_spill] sm:$0xff] %v4138_v6  ;;  %v4185_v1 = vand.u32 7, %v306_v20  ;;  %v3447_v20 = vld [vmem:[#allocation5 + $0x168] sm:$0xff]  ;;  %p3753_p1 = scmp.ne.s32.totalorder %s3751_s7, %s3752_s13  ;;  %p3757_p11 = scmp.lt.s32.totalorder %s3751_s7, %s5376_s5 }
  0x49   : > { %3552 = vmatpush.bf16.msra.mxu2 %v3412_v21  ;;  %470 = vmatpush.bf16.msra.mxu0 %v3412_v21  ;;  %5558 = vst [vmem:[#allocation20_spill] sm:$0xff] %v4142_v7  ;;  %v5395_v21 = vand.u32 7, %v4055_v49  ;;  %p3758_p2 = scmp.lt.s32.totalorder %s3756_s29, %s3752_s13 }
  0x4a   : > { %3560 = vmatpush.bf16.msra.mxu3 %v3404_v22  ;;  %547 = vmatpush.bf16.msra.mxu1 %v3404_v22  ;;  %v3440_v22 = vld [vmem:[#allocation5 + $0x130] sm:$0xff]  ;;  %p3754_p4 = pnand %p3753_p1, %p3912_p3 }
  0x4b   : > { %vm4191_vm9 = vcmp.ge.s32.totalorder %v5395_v21, 1  ;;  %v3438_v21 = vld [vmem:[#allocation5 + $0x120] sm:$0xff]  ;;  %p3759_p9 = por %p3758_p2, %p3757_p11 }
  0x4c   : > { %p3755_p8 = pneg %p3754_p4 }
  0x4d   : > { %3553 = vmatpush.bf16.msra.mxu2 %v3411_v35  ;;  %471 = vmatpush.bf16.msra.mxu0 %v3411_v35  ;;  %v4174_v35 = vld [vmem:[%s3948_s16 + $0x28] sm:$0xff] }
  0x4e   : > { %3561 = vmatpush.bf16.msra.mxu3 %v3403_v36  ;;  %548 = vmatpush.bf16.msra.mxu1 %v3403_v36  ;;  %v5392_v36 = vand.u32 7, %v4058_v50  ;;  %p3760_p10 = pnand %p3759_p9, %p3755_p8 }
  0x50   : > { %vm4197_vm6 = vcmp.ge.s32.totalorder %v5392_v36, 1 }
  0x51   : > { %3554 = vmatpush.bf16.msra.mxu2 %v3410_v51  ;;  %472 = vmatpush.bf16.msra.mxu0 %v3410_v51  ;;  %v3431_v51 = vld [vmem:[#allocation5 + $0xe8] sm:$0xff] }
  0x52   : > { %3562 = vmatpush.bf16.msra.mxu3 %v3402_v52  ;;  %549 = vmatpush.bf16.msra.mxu1 %v3402_v52  ;;  %v4178_v52 = vld [vmem:[%s3948_s16 + $0x8] sm:$0xff] }
  0x54   : > { %2668 = vmatmul.msk.bf16.vlgmr.msra.gmra.mxu2 %vm4028_vm5, %v4102_v59  ;;  %2662 = vmatmul.msk.bf16.vlgmr.msra.gmra.mxu0 %vm4132_vm15, %v4138_v6  ;;  %vm4228_vm5 = vcmp.ge.s32.totalorder %v5394_v2, 1  ;;  %v5576_v2 = vmov 0  ;;  %v5620_v6 = vmov 0 }
  0x55   : > { %681 = vmatpush.bf16.msrb.mxu2 %v3425_v60  ;;  %2712 = vmatmul.msk.bf16.vlgmr.msra.gmra.mxu3 %vm5378_vm14, %v4121_v0  ;;  %v4180_v60 = vand.u32 7, %v305_v15  ;;  %vm5391_vm14 = vcmp.ge.s32.totalorder %v4158_v16, 1  ;;  %v320_v15 = vrot.slane %v4178_v52, 7 }
  0x56   : > { %795 = vmatpush.bf16.msrb.mxu3 %v3433_v61  ;;  %2706 = vmatmul.msk.bf16.vlgmr.msra.gmra.mxu1 %vm5379_vm2, %v4142_v7  ;;  %v5390_v61 = vand.u32 7, %v4113_v63  ;;  %vm5388_vm2 = vcmp.ge.s32.totalorder %v4160_v17, 1  ;;  %vm4221_vm11 = vmand %vm5391_vm14, %vm4191_vm9  ;;  %v3434_v7 = vld [vmem:[#allocation5 + $0x100] sm:$0xff] }
  0x57   : > { %901 = vmatpush.bf16.msrb.mxu0 %v3441_v10  ;;  %1015 = vmatpush.bf16.msrb.mxu1 %v3449_v11  ;;  %v324_v10 = vrot.slane %v4174_v35, 7  ;;  %v5559_v11 = vmov 0  ;;  %vm4206_vm1 = vmpackc.low %vm5388_vm2, %vm5391_vm14  ;;  %vm5575_vm2 = vcmp.ge.s32.totalorder %v4160_v17, 1 }
  0x58   : > { %v5560_v11 = vsel %vm4191_vm9, 4294967295, %v5559_v11  ;;  %vm4213_vm8 = vcmp.ge.s32.totalorder %v5390_v61, 1  ;;  %vm5574_vm14 = vmmov %vm5573_vm0  ;;  %vm5619_vm9 = vcmp.ge.s32.totalorder %v4003_v33, 1 }
  0x59   : > { %682 = vmatpush.bf16.msrb.mxu2 %v3424_v12  ;;  %v3439_v12 = vld [vmem:[#allocation5 + $0x128] sm:$0xff]  ;;  %v4236_v61 = vsel %vm5573_vm0, %v324_v10, %v325_v43  ;;  %v4242_v36 = vsel %vm5574_vm14, %v323_v39, %v324_v10  ;;  %vm4248_vm12 = vmand %vm5575_vm2, %vm4197_vm6  ;;  %v4256_v43 = vsel %vm5573_vm0, %v320_v15, %v321_v37  ;;  %vm5580_vm2 = vcmp.ge.s32.totalorder %v4180_v60, 1  ;;  %v3421_v37 = vld [vmem:[#allocation5 + $0x98] sm:$0xff] }
  0x5a   : > { %796 = vmatpush.bf16.msrb.mxu3 %v3432_v13  ;;  %v5561_v13 = vmov 0  ;;  %v5577_v2 = vsel %vm4248_vm12, 4294967295, %v5576_v2  ;;  %vm5579_vm14 = vmmov %vm5573_vm0  ;;  %v5581_v10 = vmov 0  ;;  %vm5584_vm0 = vcmp.ge.s32.totalorder %v4185_v1, 1 }
  0x5b   : > { %902 = vmatpush.bf16.msrb.mxu0 %v3440_v22  ;;  %v5562_v13 = vsel %vm4197_vm6, 4294967295, %v5561_v13  ;;  %1016 = vmatpush.bf16.msrb.mxu1 %v3448_v38  ;;  %v5563_v22 = vmov 0  ;;  %v5566_v38 = vmov 0  ;;  %5578 = vst [vmem:[#allocation23_spill] sm:$0xff] %v5577_v2  ;;  %v4262_v39 = vsel %vm5579_vm14, %v319_v42, %v320_v15  ;;  %vm4268_vm13 = vmand %vm5580_vm2, %vm4213_vm8 }
  0x5c   : > { %v5564_v22 = vsel %vm4206_vm1, 4294967295, %v5563_v22  ;;  %v5567_v38 = vsel %vm4213_vm8, 4294967295, %v5566_v38  ;;  %v5582_v10 = vsel %vm4268_vm13, 4294967295, %v5581_v10  ;;  %vm4276_vm14 = vmand %vm5584_vm0, %vm4228_vm5  ;;  %v5585_v42 = vmov 0 }
  0x5d   : > { %683 = vmatpush.bf16.msrb.mxu2 %v3423_v44  ;;  %5565 = vst [vmem:[#allocation21_spill] sm:$0xff] %v5564_v22  ;;  %v5568_v44 = vmov 0  ;;  %v5586_v42 = vsel %vm4276_vm14, 4294967295, %v5585_v42  ;;  %v4282_v15 = vpack.c.bf16 %v3998_v31, %v4174_v35  ;;  %vm5590_vm15 = vmmov %vm5580_vm2  ;;  %v4306_v23 = vpack.c.bf16 %v4256_v43, %v4262_v39  ;;  %v3419_v22 = vld [vmem:[#allocation5 + $0x88] sm:$0xff] }
  0x5e   : > { %797 = vmatpush.bf16.msrb.mxu3 %v3431_v51  ;;  %v5569_v44 = vsel %vm4221_vm11, 4294967295, %v5568_v44  ;;  %v5571_v51 = vmov 0  ;;  %5583 = vst [vmem:[#allocation24_spill] sm:$0xff] %v5582_v10  ;;  %vm4296_vm6 = vmpackc.low %vm5584_vm0, %vm5590_vm15  ;;  %v5600_v2 = vmov 0  ;;  %v3427_v10 = vld [vmem:[#allocation5 + $0xc8] sm:$0xff] }
  0x5f   : > { %5570 = vst [vmem:[#allocation22_spill] sm:$0xff] %v5569_v44  ;;  %v5572_v51 = vsel %vm4228_vm5, 4294967295, %v5571_v51  ;;  %903 = vmatpush.bf16.msrb.mxu0 %v3439_v12  ;;  %1017 = vmatpush.bf16.msrb.mxu1 %v3447_v20  ;;  %v3446_v12 = vld [vmem:[#allocation5 + $0x160] sm:$0xff]  ;;  %v4302_v20 = vpack.c.bf16 %v3985_v26, %v4178_v52  ;;  %vm5410_vm2 = vmpackc.low %vm4276_vm14, %vm4268_vm13  ;;  %v5599_v44 = vand.u32 7, %v3964_v9  ;;  %v5607_v9 = vmov 0 }
  0x60   : > { %5587 = vst [vmem:[#allocation25_spill] sm:$0xff] %v5586_v42  ;;  %vm5594_vm15 = vmpackc.low %vm4248_vm12, %vm4221_vm11  ;;  %vm5606_vm12 = vcmp.ge.s32.totalorder %v3974_v19, 1  ;;  %vm5430_vm13 = vcmp.lt.s32.totalorder %v3958_v5, 7  ;;  %v5612_v42 = vand.u32 7, %v3969_v14  ;;  %v3457_v14 = vld [vmem:[#allocation5 + $0x1b8] sm:$0xff] }
  0x61   : > { %684 = vmatpush.bf16.msrb.mxu2 %v3422_v34  ;;  %5588 = vst [vmem:[#allocation26_spill] sm:$0xff] %v4282_v15  ;;  %v5591_v34 = vmov 0 }
  0x62   : > { %798 = vmatpush.bf16.msrb.mxu3 %v3430_v32  ;;  %v4290_v32 = vpack.c.bf16 %v4236_v61, %v4242_v36  ;;  %v5592_v34 = vsel %vm4296_vm6, 4294967295, %v5591_v34  ;;  %vm4374_vm14 = vcmp.lt.s32.totalorder %v5612_v42, 7  ;;  %v3465_v42 = vld [vmem:[#allocation5 + $0x1f8] sm:$0xff] }
  0x63   : > { %5593 = vst [vmem:[#allocation28_spill] sm:$0xff] %v5592_v34  ;;  %904 = vmatpush.bf16.msrb.mxu0 %v3438_v21  ;;  %1018 = vmatpush.bf16.msrb.mxu1 %v3446_v12  ;;  %v3444_v21 = vld [vmem:[#allocation5 + $0x150] sm:$0xff]  ;;  %v5595_v12 = vand.u32 7, %v3961_v8  ;;  %v5604_v8 = vmov 0  ;;  %v5613_v34 = vmov 0 }
  0x64   : > { %5589 = vst [vmem:[#allocation27_spill] sm:$0xff] %v4290_v32  ;;  %2671 = vmatmul.msk.bf16.gmra.mxu2 %vm4206_vm1, %v4282_v15  ;;  %2665 = vmatmul.msk.bf16.gmra.mxu0 %vm4296_vm6, %v4302_v20  ;;  %v5614_v34 = vsel %vm4374_vm14, 4294967295, %v5613_v34  ;;  %v3442_v15 = vld [vmem:[#allocation5 + $0x140] sm:$0xff] }
  0x65   : > { %685 = vmatpush.bf16.msrb.mxu2 %v3421_v37  ;;  %2715 = vmatmul.msk.bf16.gmra.mxu3 %vm5594_vm15, %v4290_v32  ;;  %vm4332_vm0 = vcmp.lt.s32.totalorder %v5595_v12, 7  ;;  %v5596_v37 = vmov 0  ;;  %vm4338_vm15 = vcmp.lt.s32.totalorder %v5599_v44, 7  ;;  %v5610_v44 = vmov 0  ;;  %v3435_v12 = vld [vmem:[#allocation5 + $0x108] sm:$0xff]  ;;  %v3473_v32 = vld [vmem:[#allocation5 + $0x238] sm:$0xff] }
  0x66   : > { %799 = vmatpush.bf16.msrb.mxu3 %v3429_v27  ;;  %2709 = vmatmul.msk.bf16.gmra.mxu1 %vm5410_vm2, %v4306_v23  ;;  %v3436_v27 = vld [vmem:[#allocation5 + $0x110] sm:$0xff]  ;;  %v5597_v37 = vsel %vm4332_vm0, 4294967295, %v5596_v37  ;;  %v5601_v2 = vsel %vm4338_vm15, 4294967295, %v5600_v2  ;;  %vm5603_vm2 = vcmp.ge.s32.totalorder %v3972_v18, 1  ;;  %vm4354_vm1 = vmand %vm5606_vm12, %vm4338_vm15  ;;  %vm5615_vm12 = vcmp.ge.s32.totalorder %v3995_v30, 1 }
  0x67   : > { %905 = vmatpush.bf16.msrb.mxu0 %v3437_v47  ;;  %1019 = vmatpush.bf16.msrb.mxu1 %v3445_v55  ;;  %5598 = vst [vmem:[#allocation29_spill] sm:$0xff] %v5597_v37  ;;  %vm4346_vm11 = vmand %vm5603_vm2, %vm4332_vm0  ;;  %v5608_v9 = vsel %vm4354_vm1, 4294967295, %v5607_v9  ;;  %v572_v47 = vrot.slane %v4178_v52, 1  ;;  %v3418_v55 = vld [vmem:[#allocation5 + $0x80] sm:$0xff]  ;;  %vm5453_vm15 = vcmp.lt.s32.totalorder %v4003_v33, 7 }
  0x68   : > { %5602 = vst [vmem:[#allocation30_spill] sm:$0xff] %v5601_v2  ;;  %v5605_v8 = vsel %vm4346_vm11, 4294967295, %v5604_v8  ;;  %vm4399_vm11 = vmand %vm5619_vm9, %vm4374_vm14 }
  0x69   : > { %686 = vmatpush.bf16.msrb.mxu2 %v3420_v45  ;;  %v571_v45 = vrot.slane %v3990_v28, 1  ;;  %v5621_v6 = vsel %vm4399_vm11, 4294967295, %v5620_v6  ;;  %v585_v19 = vsel %vm5430_vm13, %v572_v47, %v573_v4  ;;  %vm5653_vm1 = vmpackc.low %vm4228_vm5, %vm4213_vm8 }
  0x6a   : > { %800 = vmatpush.bf16.msrb.mxu3 %v3428_v58  ;;  %v5609_v58 = vand.u32 7, %v3958_v5 }
  0x6b   : > { %906 = vmatpush.bf16.msrb.mxu0 %v3436_v27  ;;  %1020 = vmatpush.bf16.msrb.mxu1 %v3444_v21  ;;  %v5616_v27 = vmov 0  ;;  %v586_v21 = vsel %vm5430_vm13, %v571_v45, %v572_v47  ;;  %v3456_v47 = vld [vmem:[#allocation5 + $0x1b0] sm:$0xff] }
  0x6c   : > { %vm4363_vm2 = vcmp.lt.s32.totalorder %v5609_v58, 7  ;;  %v3443_v58 = vld [vmem:[#allocation5 + $0x148] sm:$0xff] }
  0x6d   : > { %v5611_v44 = vsel %vm4363_vm2, 4294967295, %v5610_v44  ;;  %687 = vmatpush.bf16.msrb.mxu2 %v3419_v22  ;;  %vm4383_vm6 = vmand %vm5615_vm12, %vm4363_vm2  ;;  %v5618_v22 = vrot.slane %v3993_v29, 1 }
  0x6e   : > { %801 = vmatpush.bf16.msrb.mxu3 %v3427_v10  ;;  %v5617_v27 = vsel %vm4383_vm6, 4294967295, %v5616_v27  ;;  %vm5431_vm9 = vmpackc.low %vm4399_vm11, %vm4383_vm6  ;;  %vm5630_vm6 = vcmp.ge.s32.totalorder %v4158_v16, 1  ;;  %vm5633_vm11 = vcmp.ge.s32.totalorder %v4160_v17, 1 }
  0x6f   : > { %v4393_v10 = vsel %vm5430_vm13, %v5618_v22, %v571_v45  ;;  %907 = vmatpush.bf16.msrb.mxu0 %v3435_v12  ;;  %1021 = vmatpush.bf16.msrb.mxu1 %v3443_v58  ;;  %v2793_v45 = vpack.c.bf16 %v4262_v39, %v4090_v57  ;;  %vm5432_vm12 = vmpackc.low %vm4050_vm10, %vm4035_vm7  ;;  %v3464_v57 = vld [vmem:[#allocation5 + $0x1f0] sm:$0xff]  ;;  %v2869_v39 = vpack.c.bf16 %v585_v19, %v586_v21  ;;  %v5627_v12 = vmov 0  ;;  %v3471_v58 = vld [vmem:[#allocation5 + $0x228] sm:$0xff] }
  0x70   : > { %v4412_v22 = vpack.c.bf16 %v586_v21, %v4393_v10  ;;  %vm5434_vm13 = vmpackc.low %vm4374_vm14, %vm4363_vm2  ;;  %v5637_v21 = vmov 0 }
  0x71   : > { %688 = vmatpush.bf16.msrb.mxu2 %v3418_v55  ;;  %v3472_v55 = vld [vmem:[#allocation5 + $0x230] sm:$0xff] }
  0x72   : > { %802 = vmatpush.bf16.msrb.mxu3 %v3426_v62  ;;  %v832_v62 = vpack.c.bf16 %v4178_v52, %v3990_v28  ;;  %v3455_v28 = vld [vmem:[#allocation5 + $0x1a8] sm:$0xff]  ;;  %v5622_v52 = vand.u32 7, %v4055_v49  ;;  %v5634_v49 = vmov 0 }
  0x73   : > { %908 = vmatpush.bf16.msrb.mxu0 %v3434_v7  ;;  %1022 = vmatpush.bf16.msrb.mxu1 %v3442_v15  ;;  %v3463_v7 = vld [vmem:[#allocation5 + $0x1e8] sm:$0xff]  ;;  %v5623_v15 = vmov 0 }
  0x74   : > { %2750 = vmatmul.msk.bf16.vlgmr.msrb.gmra.mxu2 %vm5431_vm9, %v4412_v22  ;;  %vm4442_vm9 = vcmp.lt.s32.totalorder %v5622_v52, 7  ;;  %v3461_v52 = vld [vmem:[#allocation5 + $0x1d8] sm:$0xff] }
  0x75   : > { %1145 = vmatpush.bf16.msra.mxu2 %v3457_v14  ;;  %2794 = vmatmul.msk.bf16.vlgmr.msrb.gmra.mxu3 %vm5432_vm12, %v2793_v45  ;;  %v5624_v15 = vsel %vm4442_vm9, 4294967295, %v5623_v15  ;;  %v5631_v14 = vmov 0  ;;  %v3454_v45 = vld [vmem:[#allocation5 + $0x1a0] sm:$0xff] }
  0x76   : > { %1259 = vmatpush.bf16.msra.mxu3 %v3465_v42  ;;  %909 = vmatmul.bf16.vlgmr.msrb.gmra.mxu0 %v832_v62  ;;  %5625 = vst [vmem:[#allocation31_spill] sm:$0xff] %v5624_v15  ;;  %v5636_v42 = vand.u32 7, %v4113_v63  ;;  %v5640_v62 = vand.u32 7, %v4126_v3  ;;  %v575_v63 = vrot.slane %v3982_v25, 1 }
  0x77   : > { %1381 = vmatpush.bf16.msra.mxu0 %v3473_v32  ;;  %2870 = vmatmul.msk.bf16.vlgmr.msrb.gmra.mxu1 %vm5434_vm13, %v2869_v39  ;;  %v5626_v32 = vand.u32 7, %v4058_v50  ;;  %vm4456_vm13 = vmand %vm5630_vm6, %vm4442_vm9  ;;  %v574_v50 = vrot.slane %v3979_v24, 1  ;;  %v3470_v39 = vld [vmem:[#allocation5 + $0x220] sm:$0xff]  ;;  %vm5647_vm6 = vcmp.lt.s32.totalorder %v3958_v5, 7 }
  0x78   : > { %v5632_v14 = vsel %vm4456_vm13, 4294967295, %v5631_v14  ;;  %vm4471_vm2 = vcmp.lt.s32.totalorder %v5636_v42, 7  ;;  %vm5648_vm13 = vcmp.ge.s32.totalorder %v4185_v1, 1  ;;  %v2796_v42 = vpack.c.bf16 %v4070_v54, %v4256_v43  ;;  %v3467_v54 = vld [vmem:[#allocation5 + $0x208] sm:$0xff] }
  0x79   : > { %1146 = vmatpush.bf16.msra.mxu2 %v3456_v47  ;;  %vm4448_vm12 = vcmp.lt.s32.totalorder %v5626_v32, 7  ;;  %v5638_v21 = vsel %vm4471_vm2, 4294967295, %v5637_v21  ;;  %v5641_v47 = vmov 0  ;;  %v584_v3 = vsel %vm5647_vm6, %v573_v4, %v574_v50 }
  0x7a   : > { %1260 = vmatpush.bf16.msra.mxu3 %v3464_v57  ;;  %v5628_v12 = vsel %vm4448_vm12, 4294967295, %v5627_v12  ;;  %vm4464_vm14 = vmand %vm5633_vm11, %vm4448_vm12  ;;  %5639 = vst [vmem:[#allocation33_spill] sm:$0xff] %v5638_v21  ;;  %vm4481_vm11 = vcmp.lt.s32.totalorder %v5640_v62, 7  ;;  %v3462_v57 = vld [vmem:[#allocation5 + $0x1e0] sm:$0xff]  ;;  %vm5644_vm12 = vcmp.ge.s32.totalorder %v4180_v60, 1  ;;  %v4510_v4 = vpack.c.bf16 %v584_v3, %v585_v19  ;;  %v3451_v19 = vld [vmem:[#allocation5 + $0x188] sm:$0xff] }
  0x7b   : > { %5629 = vst [vmem:[#allocation32_spill] sm:$0xff] %v5628_v12  ;;  %1382 = vmatpush.bf16.msra.mxu0 %v3472_v55  ;;  %v5635_v49 = vsel %vm4464_vm14, 4294967295, %v5634_v49  ;;  %v5642_v47 = vsel %vm4481_vm11, 4294967295, %v5641_v47  ;;  %vm4490_vm9 = vmand %vm5644_vm12, %vm4471_vm2  ;;  %v5645_v55 = vmov 0  ;;  %v5654_v43 = vmov 0 }
  0x7c   : > { %5643 = vst [vmem:[#allocation34_spill] sm:$0xff] %v5642_v47  ;;  %v5646_v55 = vsel %vm4490_vm9, 4294967295, %v5645_v55  ;;  %vm4500_vm14 = vmand %vm5648_vm13, %vm4481_vm11 }
  0x7d   : > { %1147 = vmatpush.bf16.msra.mxu2 %v3455_v28  ;;  %v5649_v28 = vmov 0  ;;  %vm5651_vm12 = vmmov %vm5647_vm6  ;;  %vm5454_vm6 = vcmp.lt.s32.totalorder %v3995_v30, 7 }
  0x7e   : > { %1261 = vmatpush.bf16.msra.mxu3 %v3463_v7  ;;  %v5650_v28 = vsel %vm4500_vm14, 4294967295, %v5649_v28  ;;  %v3453_v7 = vld [vmem:[#allocation5 + $0x198] sm:$0xff]  ;;  %v583_v32 = vsel %vm5651_vm12, %v574_v50, %v575_v63  ;;  %v833_v50 = vpack.c.bf16 %v3979_v24, %v3985_v26  ;;  %vm5452_vm12 = vmpackc.low %vm4481_vm11, %vm4471_vm2  ;;  %v3468_v24 = vld [vmem:[#allocation5 + $0x210] sm:$0xff]  ;;  %vm5671_vm2 = vnez %v5611_v44 }
  0x7f   : > { %1383 = vmatpush.bf16.msra.mxu0 %v3471_v58  ;;  %v3469_v58 = vld [vmem:[#allocation5 + $0x218] sm:$0xff]  ;;  %v2872_v62 = vpack.c.bf16 %v583_v32, %v584_v3  ;;  %vm5652_vm13 = vmpackc.low %vm4500_vm14, %vm4490_vm9  ;;  %v3459_v26 = vld [vmem:[#allocation5 + $0x1c8] sm:$0xff]  ;;  %v576_v3 = vrot.slane %v4174_v35, 1  ;;  %vm5663_vm14 = vcmp.lt.s32.totalorder %v4003_v33, 7 }
  0x80   : > { %vm5670_vm9 = vmpackc.low %vm4017_vm4, %vm4011_vm3 }
  0x81   : > { %1148 = vmatpush.bf16.msra.mxu2 %v3454_v45  ;;  %v3452_v45 = vld [vmem:[#allocation5 + $0x190] sm:$0xff] }
  0x82   : > { %1262 = vmatpush.bf16.msra.mxu3 %v3462_v57  ;;  %v3460_v57 = vld [vmem:[#allocation5 + $0x1d0] sm:$0xff] }
  0x83   : > { %1384 = vmatpush.bf16.msra.mxu0 %v3470_v39  ;;  %v5657_v39 = vmov 0 }
  0x84   : > { %2753 = vmatmul.msk.bf16.gmra.mxu2 %vm5652_vm13, %v4510_v4  ;;  %vm4554_vm13 = vmand %vm5453_vm15, %vm4050_vm10  ;;  %vm5659_vm15 = vcmp.lt.s32.totalorder %v3958_v5, 7  ;;  %vm5667_vm10 = vnez %v5608_v9 }
  0x85   : > { %1149 = vmatpush.bf16.msra.mxu2 %v3453_v7  ;;  %2797 = vmatmul.msk.bf16.gmra.mxu3 %vm5653_vm1, %v2796_v42  ;;  %vm4546_vm1 = vmand %vm5454_vm6, %vm4035_vm7  ;;  %v5658_v39 = vsel %vm4554_vm13, 4294967295, %v5657_v39  ;;  %v3450_v7 = vld [vmem:[#allocation5 + $0x180] sm:$0xff] }
  0x86   : > { %1263 = vmatpush.bf16.msra.mxu3 %v3461_v52  ;;  %914 = vmatmul.bf16.gmra.mxu0 %v833_v50  ;;  %v5655_v43 = vsel %vm4546_vm1, 4294967295, %v5654_v43  ;;  %v3458_v52 = vld [vmem:[#allocation5 + $0x1c0] sm:$0xff]  ;;  %v582_v50 = vsel %vm5659_vm15, %v575_v63, %v576_v3  ;;  %vm5660_vm6 = vmmov %vm5659_vm15  ;;  %vm5661_vm15 = vnez %v5601_v2 }
  0x87   : > { %1385 = vmatpush.bf16.msra.mxu0 %v3469_v58  ;;  %2873 = vmatmul.msk.bf16.gmra.mxu1 %vm5452_vm12, %v2872_v62  ;;  %5656 = vst [vmem:[#allocation35_spill] sm:$0xff] %v5655_v43  ;;  %v577_v58 = vrot.slane %v3998_v31, 1  ;;  %v3466_v42 = vld [vmem:[#allocation5 + $0x200] sm:$0xff]  ;;  %v2755_v62 = vpack.c.bf16 %v582_v50, %v583_v32  ;;  %vm5668_vm12 = vnez %v5605_v8  ;;  %v2802_v32 = vpack.c.bf16 %v4084_v56, %v4236_v61  ;;  %v3505_v43 = vld [vmem:[#allocation7 + $0xf8] sm:$0xff] }
  0x88   : > { %vm5669_vm11 = vmpackc.low %vm5667_vm10, %vm5668_vm12  ;;  %vm5677_vm12 = vcmp.lt.s32.totalorder %v4003_v33, 7  ;;  %v5705_v56 = vmov 0  ;;  %v5711_v61 = vld [vmem:[#allocation12_spill] sm:$0xff] }
  0x89   : > { %1150 = vmatpush.bf16.msra.mxu2 %v3452_v45  ;;  %v581_v45 = vsel %vm5660_vm6, %v576_v3, %v577_v58  ;;  %vm5662_vm6 = vcmp.lt.s32.totalorder %v3995_v30, 7  ;;  %v5682_v30 = vrot.slane %v3993_v29, 1  ;;  %v5730_v3 = vld [vmem:[#allocation27_spill] sm:$0xff] }
  0x8a   : > { %1264 = vmatpush.bf16.msra.mxu3 %v3460_v57  ;;  %v2799_v57 = vpack.c.bf16 %v4242_v36, %v4064_v53  ;;  %v2875_v63 = vpack.c.bf16 %v581_v45, %v582_v50  ;;  %vm4584_vm7 = vmpackc.low %vm5663_vm14, %vm5662_vm6  ;;  %v5664_v53 = vmov 0 }
  0x8b   : > { %1386 = vmatpush.bf16.msra.mxu0 %v3468_v24  ;;  %v5665_v53 = vsel %vm4584_vm7, 4294967295, %v5664_v53  ;;  %vm5672_vm5 = vmmov %vm5662_vm6  ;;  %vm5676_vm6 = vnez %v5614_v34  ;;  %v835_v24 = vpack.c.bf16 %v3993_v29, %v3998_v31  ;;  %v5693_v29 = vmov 0 }
  0x8c   : > { %5666 = vst [vmem:[#allocation36_spill] sm:$0xff] %v5665_v53  ;;  %vm4602_vm14 = vmand %vm5672_vm5, %vm5671_vm2  ;;  %vm5683_vm2 = vcmp.lt.s32.totalorder %v3958_v5, 7  ;;  %vm5687_vm5 = vnez %v5628_v12  ;;  %v5701_v31 = vmov 0  ;;  %v3497_v53 = vld [vmem:[#allocation7 + $0xb8] sm:$0xff] }
  0x8d   : > { %1151 = vmatpush.bf16.msra.mxu2 %v3451_v19  ;;  %v834_v19 = vpack.c.bf16 %v4174_v35, %v3982_v25  ;;  %v5673_v25 = vmov 0  ;;  %v5678_v35 = vmov 0  ;;  %v580_v33 = vsel %vm5683_vm2, %v577_v58, %v5682_v30 }
  0x8e   : > { %1265 = vmatpush.bf16.msra.mxu3 %v3459_v26  ;;  %v5674_v25 = vsel %vm4602_vm14, 4294967295, %v5673_v25  ;;  %v2758_v36 = vpack.c.bf16 %v580_v33, %v581_v45  ;;  %v2878_v26 = vpack.c.bf16 %v4393_v10, %v580_v33  ;;  %vm5688_vm2 = vnez %v5635_v49 }
  0x8f   : > { %1387 = vmatpush.bf16.msra.mxu0 %v3467_v54  ;;  %5675 = vst [vmem:[#allocation37_spill] sm:$0xff] %v5674_v25  ;;  %v5744_v30 = vmov 0 }
  0x91   : > { %1152 = vmatpush.bf16.msra.mxu2 %v3450_v7  ;;  %v5731_v7 = vld [vmem:[#allocation26_spill] sm:$0xff] }
  0x92   : > { %1266 = vmatpush.bf16.msra.mxu3 %v3458_v52 }
  0x93   : > { %1388 = vmatpush.bf16.msra.mxu0 %v3466_v42 }
  0x94   : > { %2756 = vmatmul.msk.bf16.gmra.mxu2 %vm5669_vm11, %v2755_v62  ;;  %vm4610_vm11 = vmand %vm5677_vm12, %vm5676_vm6  ;;  %vm5684_vm12 = vnez %v5560_v11  ;;  %vm5685_vm6 = vnez %v5562_v13  ;;  %v5813_v11 = vld [vmem:[#allocation35_spill] sm:$0xff]  ;;  %v5816_v13 = vld [vmem:[#allocation36_spill] sm:$0xff] }
  0x95   : > { %2800 = vmatmul.msk.bf16.gmra.mxu3 %vm5670_vm9, %v2799_v57  ;;  %v5679_v35 = vsel %vm4610_vm11, 4294967295, %v5678_v35  ;;  %vm5681_vm9 = vmpackc.low %vm5661_vm15, %vm4332_vm0  ;;  %vm5689_vm0 = vnez %v5632_v14  ;;  %v5735_v57 = vmov 0 }
  0x96   : > { %919 = vmatmul.bf16.gmra.mxu0 %v834_v19  ;;  %5680 = vst [vmem:[#allocation38_spill] sm:$0xff] %v5679_v35  ;;  %vm5471_vm10 = vmpackc.low %vm5685_vm6, %vm5684_vm12  ;;  %1758 = vmatpush.bf16.msrb.mxu3 %v3497_v53  ;;  %v3479_v53 = vld [vmem:[#allocation7 + $0x28] sm:$0xff] }
  0x97   : > { %2876 = vmatmul.msk.bf16.gmra.mxu1 %vm5681_vm9, %v2875_v63  ;;  %vm5686_vm9 = vnez %v5624_v15  ;;  %vm5690_vm4 = vmpackc.low %vm5688_vm2, %vm5689_vm0  ;;  %v5741_v63 = vmov 0  ;;  %1872 = vmatpush.bf16.msrb.mxu0 %v3505_v43 }
  0x98   : > { %vm5470_vm15 = vmpackc.low %vm5687_vm5, %vm5686_vm9 }
  0x99   : > { %vm5691_vm0 = vmpackc.low %vm4554_vm13, %vm4546_vm1  ;;  %vm5700_vm1 = vnez %v5638_v21 }
  0xa4   : > { %2759 = vmatmul.msk.bf16.gmra.mxu2 %vm5690_vm4, %v2758_v36  ;;  %vm5692_vm4 = vmpackc.low %vm4610_vm11, %vm4602_vm14 }
  0xa5   : > { %2803 = vmatmul.msk.bf16.gmra.mxu3 %vm5471_vm10, %v2802_v32  ;;  %vm1055_vm10 = vcmp.lt.s32.totalorder %v4185_v1, 7  ;;  %v5712_v1 = vmov 0 }
  0xa6   : > { %924 = vmatmul.bf16.gmra.mxu0 %v835_v24  ;;  %v5747_v24 = vld [vmem:[#allocation20_spill] sm:$0xff] }
  0xa7   : > { %2879 = vmatmul.msk.bf16.gmra.mxu1 %vm5470_vm15, %v2878_v26  ;;  %vm1054_vm15 = vcmp.lt.s32.totalorder %v4180_v60, 7  ;;  %v5708_v60 = vmov 0  ;;  %v5748_v26 = vld [vmem:[#allocation19_spill] sm:$0xff] }
  0xa8   : > { %vm4674_vm2 = vmand %vm1054_vm15, %vm4213_vm8 }
  0xa9   : > { %v5694_v29 = vsel %vm4674_vm2, 4294967295, %v5693_v29  ;;  %vm4686_vm14 = vmand %vm1054_vm15, %vm5700_vm1 }
  0xaa   : > { %5695 = vst [vmem:[#allocation39_spill] sm:$0xff] %v5694_v29  ;;  %v5702_v31 = vsel %vm4686_vm14, 4294967295, %v5701_v31  ;;  %vm4700_vm8 = vmpackc.low %vm1055_vm10, %vm1054_vm15  ;;  %vm1057_vm15 = vcmp.lt.s32.totalorder %v5711_v61, 7 }
  0xab   : > { %5703 = vst [vmem:[#allocation41_spill] sm:$0xff] %v5702_v31  ;;  %v5709_v60 = vsel %vm4700_vm8, 4294967295, %v5708_v60 }
  0xac   : > { %5710 = vst [vmem:[#allocation43_spill] sm:$0xff] %v5709_v60 }
  0xb4   : > { %2914 = vmatmul.msk.bf16.vlgmr.msra.gmra.mxu2 %vm5691_vm0, %v4306_v23  ;;  %vm5696_vm0 = vnez %v5572_v51  ;;  %v5697_v23 = vmov 0  ;;  %v3514_v51 = vld [vmem:[#allocation7 + $0x140] sm:$0xff] }
  0xb5   : > { %2958 = vmatmul.msk.bf16.vlgmr.msra.gmra.mxu3 %vm4584_vm7, %v4302_v20  ;;  %vm4680_vm7 = vmand %vm1055_vm10, %vm5696_vm0  ;;  %v5727_v20 = vmov 0 }
  0xb6   : > { %3002 = vmatmul.msk.bf16.vlgmr.msra.gmra.mxu0 %vm5692_vm4, %v4510_v4  ;;  %v5698_v23 = vsel %vm4680_vm7, 4294967295, %v5697_v23  ;;  %vm5704_vm4 = vnez %v5642_v47  ;;  %vm5478_vm13 = vmpackc.low %vm4680_vm7, %vm4674_vm2  ;;  %v3481_v47 = vld [vmem:[#allocation7 + $0x38] sm:$0xff] }
  0xb7   : > { %5699 = vst [vmem:[#allocation40_spill] sm:$0xff] %v5698_v23  ;;  %vm4692_vm11 = vmand %vm1055_vm10, %vm5704_vm4  ;;  %vm1056_vm10 = vcmp.lt.s32.totalorder %v3972_v18, 7  ;;  %v5724_v18 = vmov 0  ;;  %1636 = vmatpush.bf16.msrb.mxu2 %v3481_v47 }
  0xb8   : > { %v5706_v56 = vsel %vm4692_vm11, 4294967295, %v5705_v56  ;;  %vm5482_vm1 = vmpackc.low %vm4692_vm11, %vm4686_vm14 }
  0xb9   : > { %5707 = vst [vmem:[#allocation42_spill] sm:$0xff] %v5706_v56  ;;  %vm4726_vm4 = vmand %vm1056_vm10, %vm4011_vm3 }
  0xba   : > { %v5713_v1 = vsel %vm4726_vm4, 4294967295, %v5712_v1  ;;  %vm4752_vm3 = vmpackc.low %vm1057_vm15, %vm1056_vm10 }
  0xbb   : > { %5714 = vst [vmem:[#allocation12_spill] sm:$0xff] %v5713_v1  ;;  %v5728_v20 = vsel %vm4752_vm3, 4294967295, %v5727_v20 }
  0xbc   : > { %5729 = vst [vmem:[#allocation47_spill] sm:$0xff] %v5728_v20 }
  0xc4   : > { %2917 = vmatmul.msk.bf16.gmra.mxu2 %vm5478_vm13, %v4121_v0  ;;  %vm5715_vm13 = vnez %v5534_v41  ;;  %v5720_v0 = vmov 0  ;;  %v5802_v41 = vld [vmem:[#allocation22_spill] sm:$0xff] }
  0xc5   : > { %2961 = vmatmul.msk.bf16.gmra.mxu3 %vm4700_vm8, %v4102_v59  ;;  %vm4732_vm2 = vmand %vm1057_vm15, %vm5715_vm13  ;;  %v5716_v59 = vmov 0  ;;  %vm5719_vm8 = vnez %v5597_v37  ;;  %v3487_v37 = vld [vmem:[#allocation7 + $0x68] sm:$0xff] }
  0xc6   : > { %3005 = vmatmul.msk.bf16.gmra.mxu0 %vm5482_vm1, %v2755_v62  ;;  %v5717_v59 = vsel %vm4732_vm2, 4294967295, %v5716_v59  ;;  %vm4738_vm14 = vmand %vm1056_vm10, %vm5719_vm8  ;;  %vm5723_vm1 = vnez %v5601_v2  ;;  %vm1058_vm10 = vcmp.lt.s32.totalorder %v4158_v16, 7  ;;  %v5732_v62 = vmov 0 }
  0xc7   : > { %5718 = vst [vmem:[#allocation44_spill] sm:$0xff] %v5717_v59  ;;  %v5721_v0 = vsel %vm4738_vm14, 4294967295, %v5720_v0  ;;  %vm4744_vm11 = vmand %vm1057_vm15, %vm5723_vm1  ;;  %vm1059_vm15 = vcmp.lt.s32.totalorder %v4160_v17, 7  ;;  %v5738_v16 = vmov 0 }
  0xc8   : > { %5722 = vst [vmem:[#allocation45_spill] sm:$0xff] %v5721_v0  ;;  %v5725_v18 = vsel %vm4744_vm11, 4294967295, %v5724_v18  ;;  %vm5486_vm7 = vmpackc.low %vm4732_vm2, %vm4726_vm4 }
  0xc9   : > { %5726 = vst [vmem:[#allocation46_spill] sm:$0xff] %v5725_v18  ;;  %vm5487_vm8 = vmpackc.low %vm4744_vm11, %vm4738_vm14 }
  0xca   : > { %vm4794_vm14 = vmand %vm1058_vm10, %vm5686_vm9 }
  0xcb   : > { %v5739_v16 = vsel %vm4794_vm14, 4294967295, %v5738_v16  ;;  %vm4804_vm11 = vmand %vm1059_vm15, %vm5687_vm5 }
  0xcc   : > { %5740 = vst [vmem:[#allocation48_spill] sm:$0xff] %v5739_v16  ;;  %v5742_v63 = vsel %vm4804_vm11, 4294967295, %v5741_v63  ;;  %vm4812_vm4 = vmpackc.low %vm1059_vm15, %vm1058_vm10 }
  0xcd   : > { %5743 = vst [vmem:[#allocation49_spill] sm:$0xff] %v5742_v63  ;;  %v5745_v30 = vsel %vm4812_vm4, 4294967295, %v5744_v30  ;;  %vm5518_vm9 = vmpackc.low %vm4804_vm11, %vm4794_vm14 }
  0xce   : > { %5746 = vst [vmem:[#allocation50_spill] sm:$0xff] %v5745_v30 }
  0xd1   : > { %v474_v10 = vpop.f32.mrf.mxu0 }
  0xd3   : > { %v551_v4 = vpop.f32.mrf.mxu1 }
  0xd4   : > { %v552_v54 = vadd.f32 %v551_v4, %v474_v10  ;;  %2920 = vmatmul.msk.bf16.gmra.mxu2 %vm5486_vm7, %v5730_v3  ;;  %vm4782_vm7 = vmand %vm1058_vm10, %vm5684_vm12  ;;  %vm5749_vm10 = vcmp.lt.s32.totalorder %v3958_v5, 7 }
  0xd5   : > { %2964 = vmatmul.msk.bf16.gmra.mxu3 %vm4752_vm3, %v5731_v7  ;;  %v5733_v62 = vsel %vm4782_vm7, 4294967295, %v5732_v62 }
  0xd6   : > { %3008 = vmatmul.msk.bf16.gmra.mxu0 %vm5487_vm8, %v2758_v36  ;;  %5734 = vst [vmem:[#allocation27_spill] sm:$0xff] %v5733_v62  ;;  %vm4788_vm8 = vmand %vm1059_vm15, %vm5685_vm6  ;;  %vm5750_vm15 = vcmp.lt.s32.totalorder %v3958_v5, 1  ;;  %v3521_v5 = vld [vmem:[#allocation7 + $0x178] sm:$0xff] }
  0xd7   : > { %v484_v52 = vpop.f32.mrf.mxu2  ;;  %v5736_v57 = vsel %vm4788_vm8, 4294967295, %v5735_v57  ;;  %vm5519_vm3 = vmpackc.low %vm4788_vm8, %vm4782_vm7  ;;  %vm5772_vm7 = vnez %v5539_v46 }
  0xd8   : > { %v561_v58 = vpop.f32.mrf.mxu3  ;;  %5737 = vst [vmem:[#allocation26_spill] sm:$0xff] %v5736_v57 }
  0xd9   : > { %v562_v42 = vadd.f32 %v561_v58, %v484_v52  ;;  %v4775_v50 = vpop.f32.mrf.mxu0 }
  0xdb   : > { %v4777_v45 = vpop.f32.mrf.mxu1 }
  0xdf   : > { %v4798_v19 = vpop.f32.mrf.mxu2 }
  0xe0   : > { %v4800_v17 = vpop.f32.mrf.mxu3 }
  0xe1   : > { %v479_v33 = vpop.f32.mrf.mxu0 }
  0xe3   : > { %v556_v36 = vpop.f32.mrf.mxu1 }
  0xe4   : > { %v557_v32 = vadd.f32 %v556_v36, %v479_v33  ;;  %2923 = vmatmul.msk.bf16.gmra.mxu2 %vm5519_vm3, %v5747_v24  ;;  %vm5752_vm3 = vmmov %vm5749_vm10 }
  0xe5   : > { %2967 = vmatmul.msk.bf16.gmra.mxu3 %vm4812_vm4, %v5748_v26  ;;  %vm5771_vm4 = vnez %v5544_v48  ;;  %v3518_v48 = vld [vmem:[#allocation7 + $0x160] sm:$0xff] }
  0xe6   : > { %3011 = vmatmul.msk.bf16.gmra.mxu0 %vm5518_vm9, %v4412_v22  ;;  %vm5751_vm9 = vmmov %vm5750_vm15 }
  0xe7   : > { %v489_v61 = vpop.f32.mrf.mxu2  ;;  %vm5773_vm8 = vmpackc.low %vm5771_vm4, %vm5772_vm7 }
  0xe8   : > { %v566_v10 = vpop.f32.mrf.mxu3 }
  0xe9   : > { %v567_v4 = vadd.f32 %v566_v10, %v489_v61  ;;  %v4835_v3 = vpop.f32.mrf.mxu0 }
  0xef   : > { %v4837_v7 = vpop.f32.mrf.mxu2 }
  0xf0   : > { %v4839_v52 = vpop.f32.mrf.mxu3 }
  0xf3   : > { %v910_v58 = vpop.f32.mrf.mxu0 }
  0xf7   : > { %v690_v33 = vpop.f32.mrf.mxu2 }
  0xf8   : > { %v804_v36 = vpop.f32.mrf.mxu3  ;;  %v710_v24 = vadd.f32 %v690_v33, %v552_v54 }
  0xfa   : > { %v824_v26 = vadd.f32 %v804_v36, %v710_v24  ;;  %v558_v24 = vpop.f32.mrf.mxu1 }
  0xfb   : > { %v912_v0 = vpop.f32.mrf.mxu0 }
  0xfc   : > { %v930_v63 = vadd.f32 %v910_v58, %v824_v26 }
  0xff   : > { %v692_v18 = vpop.f32.mrf.mxu2 }
 0x100   : > { %v806_v16 = vpop.f32.mrf.mxu3 }
 0x103   : > { %v915_v31 = vpop.f32.mrf.mxu0 }
 0x107   : > { %v695_v22 = vpop.f32.mrf.mxu2 }
 0x108   : > { %v809_v56 = vpop.f32.mrf.mxu3  ;;  %v712_v25 = vadd.f32 %v695_v22, %v557_v32  ;;  %v1024_v32 = vpop.f32.mrf.mxu1 }
 0x10a   : > { %v826_v61 = vadd.f32 %v809_v56, %v712_v25 }
 0x10b   : > { %v4841_v10 = vpop.f32.mrf.mxu0 }
 0x10c   : > { %v4843_v35 = vadd.f32 %v915_v31, %v826_v61  ;;  %v3489_v31 = vld [vmem:[#allocation7 + $0x78] sm:$0xff] }
 0x10d   : > { %1559 = vmatpush.bf16.msra.mxu1 %v3489_v31 }
 0x10f   : > { %v697_v30 = vpop.f32.mrf.mxu2 }
 0x110   : > { %v4845_v62 = vpop.f32.mrf.mxu3 }
 0x113   : > { %v920_v57 = vpop.f32.mrf.mxu0 }
 0x117   : > { %v700_v15 = vpop.f32.mrf.mxu2 }
 0x118   : > { %v814_v54 = vpop.f32.mrf.mxu3  ;;  %v714_v33 = vadd.f32 %v700_v15, %v562_v42  ;;  %v3488_v15 = vld [vmem:[#allocation7 + $0x70] sm:$0xff] }
 0x119   : > { %1560 = vmatpush.bf16.msra.mxu1 %v3488_v15 }
 0x11a   : > { %v828_v36 = vadd.f32 %v814_v54, %v714_v33 }
 0x11b   : > { %v4847_v58 = vpop.f32.mrf.mxu0 }
 0x11c   : > { %v4849_v26 = vadd.f32 %v920_v57, %v828_v36  ;;  %v1026_v57 = vpop.f32.mrf.mxu1  ;;  %v554_v36 = vadd.f32 %v4777_v45, %v4775_v50 }
 0x11d   : > { %1561 = vmatpush.bf16.msra.mxu1 %v3487_v37 }
 0x11e   : > { %v711_v31 = vadd.f32 %v692_v18, %v554_v36  ;;  %v559_v18 = vadd.f32 %v558_v24, %v4835_v3  ;;  %v3503_v3 = vld [vmem:[#allocation7 + $0xe8] sm:$0xff] }
 0x11f   : > { %v4851_v12 = vpop.f32.mrf.mxu2 }
 0x120   : > { %v4853_v25 = vpop.f32.mrf.mxu3 }
 0x123   : > { %v925_v56 = vpop.f32.mrf.mxu0 }
 0x124   : > { %v1029_v60 = vpop.f32.mrf.mxu1 }
 0x127   : > { %v705_v22 = vpop.f32.mrf.mxu2 }
 0x128   : > { %v819_v61 = vpop.f32.mrf.mxu3  ;;  %v716_v20 = vadd.f32 %v705_v22, %v567_v4  ;;  %v1044_v4 = vadd.f32 %v1024_v32, %v930_v63  ;;  %v3485_v32 = vld [vmem:[#allocation7 + $0x58] sm:$0xff] }
 0x12a   : > { %v830_v1 = vadd.f32 %v819_v61, %v716_v20  ;;  %v825_v20 = vadd.f32 %v806_v16, %v711_v31  ;;  %v4869_v16 = vld [vmem:[%s5373_s2] ss:$0 sm:$0xff] }
 0x12b   : > { %v4855_v59 = vpop.f32.mrf.mxu0 }
 0x12c   : > { %v4857_v42 = vadd.f32 %v925_v56, %v830_v1  ;;  %v3486_v56 = vld [vmem:[#allocation7 + $0x60] sm:$0xff]  ;;  %v931_v15 = vadd.f32 %v912_v0, %v825_v20  ;;  %v713_v0 = vadd.f32 %v697_v30, %v559_v18  ;;  %v3496_v20 = vld [vmem:[#allocation7 + $0xb0] sm:$0xff]  ;;  %v3495_v30 = vld [vmem:[#allocation7 + $0xa8] sm:$0xff] }
 0x12d   : > { %1562 = vmatpush.bf16.msra.mxu1 %v3486_v56  ;;  %1759 = vmatpush.bf16.msrb.mxu3 %v3496_v20  ;;  %v3502_v18 = vld [vmem:[#allocation7 + $0xe0] sm:$0xff]  ;;  %v3493_v20 = vld [vmem:[#allocation7 + $0x98] sm:$0xff] }
 0x12e   : > { %v1045_v21 = vadd.f32 %v1026_v57, %v931_v15  ;;  %v1031_v57 = vpop.f32.mrf.mxu1  ;;  %v827_v47 = vadd.f32 %v4845_v62, %v713_v0 }
 0x12f   : > { %v4859_v54 = vpop.f32.mrf.mxu2 }
 0x130   : > { %v4861_v33 = vpop.f32.mrf.mxu3 }
 0x131   : > { %1563 = vmatpush.bf16.msra.mxu1 %v3485_v32  ;;  %1760 = vmatpush.bf16.msrb.mxu3 %v3495_v30 }
 0x133   : > { %v1390_v2 = vpop.f32.mrf.mxu0 }
 0x137   : > { %v1154_v22 = vpop.f32.mrf.mxu2 }
 0x138   : > { %v1268_v61 = vpop.f32.mrf.mxu3  ;;  %v1174_v1 = vadd.f32 %v1154_v22, %v1044_v4  ;;  %v3480_v4 = vld [vmem:[#allocation7 + $0x30] sm:$0xff] }
 0x139   : > { %v3504_v22 = vld [vmem:[#allocation7 + $0xf0] sm:$0xff]  ;;  %1637 = vmatpush.bf16.msrb.mxu2 %v3480_v4  ;;  %v3477_v4 = vld [vmem:[#allocation7 + $0x18] sm:$0xff] }
 0x13a   : > { %v1288_v23 = vadd.f32 %v1268_v61, %v1174_v1  ;;  %1873 = vmatpush.bf16.msrb.mxu0 %v3504_v22 }
 0x13b   : > { %v1392_v29 = vpop.f32.mrf.mxu0 }
 0x13c   : > { %v1410_v37 = vadd.f32 %v1390_v2, %v1288_v23 }
 0x13d   : > { %1638 = vmatpush.bf16.msrb.mxu2 %v3479_v53 }
 0x13e   : > { %v1422_v2 = vadd.f32 %v4869_v16, %v1410_v37  ;;  %1874 = vmatpush.bf16.msrb.mxu0 %v3503_v3 }
 0x13f   : > { %v1156_v50 = vpop.f32.mrf.mxu2 }
 0x140   : > { %v1270_v45 = vpop.f32.mrf.mxu3  ;;  %v1175_v63 = vadd.f32 %v1156_v50, %v1045_v21  ;;  %v1046_v21 = vadd.f32 %v1029_v60, %v4843_v35  ;;  %v4875_v1 = vmax.f32 %v1422_v2, 0.0  ;;  %v933_v35 = vadd.f32 %v4841_v10, %v827_v47  ;;  %v3478_v50 = vld [vmem:[#allocation7 + $0x20] sm:$0xff]  ;;  %v3501_v10 = vld [vmem:[#allocation7 + $0xd8] sm:$0xff] }
 0x141   : > { %1639 = vmatpush.bf16.msrb.mxu2 %v3478_v50  ;;  %v564_v47 = vadd.f32 %v4800_v17, %v4798_v19  ;;  %v3500_v17 = vld [vmem:[#allocation7 + $0xd0] sm:$0xff] }
 0x142   : > { %v1289_v36 = vadd.f32 %v1270_v45, %v1175_v63  ;;  %v3494_v45 = vld [vmem:[#allocation7 + $0xa0] sm:$0xff]  ;;  %v1034_v63 = vpop.f32.mrf.mxu1  ;;  %1875 = vmatpush.bf16.msrb.mxu0 %v3502_v18  ;;  %v1047_v0 = vadd.f32 %v1031_v57, %v933_v35  ;;  %v1438_v57 = vrot.slane %v4875_v1, 7  ;;  %v1665_v53 = vrot.slane %v4875_v1, 1 }
 0x143   : > { %v1395_v31 = vpop.f32.mrf.mxu0  ;;  %1761 = vmatpush.bf16.msrb.mxu3 %v3494_v45  ;;  %v715_v30 = vadd.f32 %v4851_v12, %v564_v47  ;;  %v3482_v47 = vld [vmem:[#allocation7 + $0x40] sm:$0xff] }
 0x144   : > { %v1411_v23 = vadd.f32 %v1392_v29, %v1289_v36  ;;  %v3484_v29 = vld [vmem:[#allocation7 + $0x50] sm:$0xff] }
 0x145   : > { %1564 = vmatpush.bf16.msra.mxu1 %v3484_v29  ;;  %1640 = vmatpush.bf16.msrb.mxu2 %v3477_v4 }
 0x146   : > { %v1423_v43 = vadd.f32 %v4869_v16, %v1411_v23  ;;  %1876 = vmatpush.bf16.msrb.mxu0 %v3501_v10  ;;  %v3475_v10 = vld [vmem:[#allocation7 + $0x8] sm:$0xff] }
 0x147   : > { %v1159_v24 = vpop.f32.mrf.mxu2  ;;  %1762 = vmatpush.bf16.msrb.mxu3 %v3493_v20 }
 0x148   : > { %v1273_v61 = vpop.f32.mrf.mxu3  ;;  %v4877_v56 = vmax.f32 %v1423_v43, 0.0  ;;  %v1176_v15 = vadd.f32 %v1159_v24, %v1046_v21  ;;  %v3483_v24 = vld [vmem:[#allocation7 + $0x48] sm:$0xff] }
 0x149   : > { %1565 = vmatpush.bf16.msra.mxu1 %v3483_v24 }
 0x14a   : > { %v1290_v60 = vadd.f32 %v1273_v61, %v1176_v15  ;;  %v1909_v37 = vpack.c.bf16 %v4877_v56, %v4875_v1  ;;  %v1439_v22 = vrot.slane %v4877_v56, 7  ;;  %v1666_v2 = vrot.slane %v4877_v56, 1  ;;  %v3476_v61 = vld [vmem:[#allocation7 + $0x10] sm:$0xff]  ;;  %1877 = vmatpush.bf16.msrb.mxu0 %v3500_v17  ;;  %v1036_v4 = vpop.f32.mrf.mxu1  ;;  %v3513_v17 = vld [vmem:[#allocation7 + $0x138] sm:$0xff] }
 0x14b   : > { %v1397_v62 = vpop.f32.mrf.mxu0  ;;  %v3492_v15 = vld [vmem:[#allocation7 + $0x90] sm:$0xff]  ;;  %1641 = vmatpush.bf16.msrb.mxu2 %v3476_v61 }
 0x14c   : > { %v1412_v32 = vadd.f32 %v1395_v31, %v1290_v60  ;;  %v4898_v35 = vsel %vm5749_vm10, %v1665_v53, %v1666_v2  ;;  %v4904_v12 = vsel %vm5750_vm15, %v1438_v57, %v1439_v22  ;;  %1763 = vmatpush.bf16.msrb.mxu3 %v3492_v15  ;;  %vm5754_vm10 = vmmov %vm5750_vm15 }
 0x14d   : > { %1566 = vmatpush.bf16.msra.mxu1 %v3482_v47  ;;  %vm5755_vm15 = vmmov %vm5754_vm10 }
 0x14e   : > { %v1424_v36 = vadd.f32 %v4869_v16, %v1412_v32 }
 0x14f   : > { %v1161_v23 = vpop.f32.mrf.mxu2  ;;  %1642 = vmatpush.bf16.msrb.mxu2 %v3475_v10 }
 0x150   : > { %v1275_v21 = vpop.f32.mrf.mxu3  ;;  %v4887_v43 = vmax.f32 %v1424_v36, 0.0  ;;  %v1177_v31 = vadd.f32 %v1161_v23, %v1047_v0  ;;  %v1048_v0 = vadd.f32 %v1034_v63, %v4849_v26  ;;  %v829_v36 = vadd.f32 %v4853_v25, %v715_v30  ;;  %v3474_v25 = vld [vmem:[#allocation7] sm:$0xff] }
 0x151   : > { %v3490_v63 = vld [vmem:[#allocation7 + $0x80] sm:$0xff]  ;;  %1978 = vmatpush.bf16.msrb.mxu1 %v3513_v17 }
 0x152   : > { %v1291_v3 = vadd.f32 %v1275_v21, %v1177_v31  ;;  %v1440_v29 = vrot.slane %v4887_v43, 7  ;;  %v1667_v19 = vrot.slane %v4887_v43, 1  ;;  %v935_v24 = vadd.f32 %v4847_v58, %v829_v36  ;;  %v3498_v30 = vld [vmem:[#allocation7 + $0xc0] sm:$0xff]  ;;  %v1039_v47 = vpop.f32.mrf.mxu1 }
 0x153   : > { %v1400_v50 = vpop.f32.mrf.mxu0  ;;  %1643 = vmatpush.bf16.msrb.mxu2 %v3474_v25  ;;  %v5062_v46 = vpack.c.bf16 %v4887_v43, %v4877_v56  ;;  %v5828_v56 = vld [vmem:[#allocation43_spill] sm:$0xff] }
 0x154   : > { %v1413_v60 = vadd.f32 %v1397_v62, %v1291_v3  ;;  %v4910_v45 = vsel %vm5751_vm9, %v1439_v22, %v1440_v29  ;;  %v4914_v18 = vsel %vm5752_vm3, %v1666_v2, %v1667_v19  ;;  %v3491_v22 = vld [vmem:[#allocation7 + $0x88] sm:$0xff]  ;;  %vm5753_vm9 = vmmov %vm5752_vm3 }
 0x155   : > { %v4918_v32 = vpack.c.bf16 %v4910_v45, %v4904_v12  ;;  %v3253_v62 = vpack.c.bf16 %v4914_v18, %v4898_v35  ;;  %v3499_v2 = vld [vmem:[#allocation7 + $0xc8] sm:$0xff]  ;;  %1764 = vmatpush.bf16.msrb.mxu3 %v3491_v22  ;;  %v569_v22 = vadd.f32 %v4839_v52, %v4837_v7 }
 0x156   : > { %v1425_v20 = vadd.f32 %v4869_v16, %v1413_v60  ;;  %1878 = vmatpush.bf16.msrb.mxu0 %v3499_v2  ;;  %v1049_v60 = vadd.f32 %v1036_v4, %v935_v24 }
 0x157   : > { %v1164_v23 = vpop.f32.mrf.mxu2  ;;  %v717_v4 = vadd.f32 %v4859_v54, %v569_v22  ;;  %2092 = vmatpush.bf16.msra.mxu2 %v3521_v5  ;;  %v3534_v5 = vld [vmem:[#allocation7 + $0x1e0] sm:$0xff] }
 0x158   : > { %v1278_v21 = vpop.f32.mrf.mxu3  ;;  %v4925_v31 = vmax.f32 %v1425_v20, 0.0  ;;  %v1178_v3 = vadd.f32 %v1164_v23, %v1048_v0 }
 0x159   : > { %1765 = vmatpush.bf16.msrb.mxu3 %v3490_v63  ;;  %v831_v17 = vadd.f32 %v4861_v33, %v717_v4 }
 0x15a   : > { %v1292_v26 = vadd.f32 %v1278_v21, %v1178_v3  ;;  %v1910_v61 = vpack.c.bf16 %v4925_v31, %v4887_v43  ;;  %1879 = vmatpush.bf16.msrb.mxu0 %v3498_v30  ;;  %v1668_v36 = vrot.slane %v4925_v31, 1  ;;  %v1441_v21 = vrot.slane %v4925_v31, 7 }
 0x15b   : > { %v1402_v20 = vpop.f32.mrf.mxu0 }
 0x15c   : > { %v1414_v15 = vadd.f32 %v1400_v50, %v1292_v26  ;;  %v3512_v50 = vld [vmem:[#allocation7 + $0x130] sm:$0xff]  ;;  %v4942_v25 = vsel %vm5752_vm3, %v1667_v19, %v1668_v36  ;;  %v4956_v54 = vsel %vm5755_vm15, %v1440_v29, %v1441_v21  ;;  %vm5758_vm15 = vmmov %vm5752_vm3 }
 0x15d   : > { %1979 = vmatpush.bf16.msrb.mxu1 %v3512_v50  ;;  %v1041_v50 = vpop.f32.mrf.mxu1  ;;  %vm5762_vm14 = vmmov %vm5758_vm15 }
 0x15e   : > { %v1426_v0 = vadd.f32 %v4869_v16, %v1414_v15  ;;  %v1050_v15 = vadd.f32 %v1039_v47, %v4857_v42 }
 0x15f   : > { %v1166_v10 = vpop.f32.mrf.mxu2 }
 0x160   : > { %v1280_v58 = vpop.f32.mrf.mxu3  ;;  %v4934_v2 = vmax.f32 %v1426_v0, 0.0  ;;  %v1179_v23 = vadd.f32 %v1166_v10, %v1049_v60 }
 0x162   : > { %v1293_v3 = vadd.f32 %v1280_v58, %v1179_v23  ;;  %v1669_v24 = vrot.slane %v4934_v2, 1  ;;  %v1442_v26 = vrot.slane %v4934_v2, 7 }
 0x163   : > { %v1405_v29 = vpop.f32.mrf.mxu0 }
 0x164   : > { %v1415_v7 = vadd.f32 %v1402_v20, %v1293_v3  ;;  %v4946_v52 = vsel %vm5753_vm9, %v1668_v36, %v1669_v24  ;;  %v4950_v63 = vsel %vm5754_vm10, %v1441_v21, %v1442_v26  ;;  %v937_v36 = vadd.f32 %v4855_v59, %v831_v17  ;;  %v3511_v3 = vld [vmem:[#allocation7 + $0x128] sm:$0xff]  ;;  %vm5756_vm9 = vmmov %vm5754_vm10 }
 0x165   : > { %v3256_v30 = vpack.c.bf16 %v4946_v52, %v4942_v25  ;;  %v4962_v19 = vpack.c.bf16 %v4950_v63, %v4956_v54  ;;  %1980 = vmatpush.bf16.msrb.mxu1 %v3511_v3  ;;  %vm5757_vm10 = vmmov %vm5756_vm9 }
 0x166   : > { %v1427_v60 = vadd.f32 %v4869_v16, %v1415_v7  ;;  %v1051_v42 = vadd.f32 %v1041_v50, %v937_v36 }
 0x167   : > { %v1169_v0 = vpop.f32.mrf.mxu2 }
 0x168   : > { %v1283_v20 = vpop.f32.mrf.mxu3  ;;  %v4967_v10 = vmax.f32 %v1427_v60, 0.0  ;;  %v1180_v58 = vadd.f32 %v1169_v0, %v1050_v15  ;;  %v3510_v60 = vld [vmem:[#allocation7 + $0x120] sm:$0xff] }
 0x169   : > { %1981 = vmatpush.bf16.msrb.mxu1 %v3510_v60 }
 0x16a   : > { %v1294_v22 = vadd.f32 %v1283_v20, %v1180_v58  ;;  %v1911_v23 = vpack.c.bf16 %v4967_v10, %v4934_v2  ;;  %v1670_v4 = vrot.slane %v4967_v10, 1  ;;  %v1443_v59 = vrot.slane %v4967_v10, 7 }
 0x16c   : > { %v1416_v21 = vadd.f32 %v1405_v29, %v1294_v22  ;;  %v1407_v29 = vpop.f32.mrf.mxu0  ;;  %v4981_v36 = vsel %vm5752_vm3, %v1669_v24, %v1670_v4  ;;  %v4985_v50 = vsel %vm5756_vm9, %v1442_v26, %v1443_v59 }
 0x16e   : > { %v1428_v33 = vadd.f32 %v4869_v16, %v1416_v21 }
 0x16f   : > { %v1171_v47 = vpop.f32.mrf.mxu2 }
 0x170   : > { %v4974_v7 = vmax.f32 %v1428_v33, 0.0  ;;  %v1181_v15 = vadd.f32 %v1171_v47, %v1051_v42  ;;  %v1285_v17 = vpop.f32.mrf.mxu3 }
 0x172   : > { %v1444_v0 = vrot.slane %v4974_v7, 7  ;;  %v1295_v20 = vadd.f32 %v1285_v17, %v1181_v15  ;;  %v1671_v58 = vrot.slane %v4974_v7, 1 }
 0x174   : > { %v1417_v22 = vadd.f32 %v1407_v29, %v1295_v20  ;;  %v4989_v21 = vsel %vm5757_vm10, %v1443_v59, %v1444_v0  ;;  %v4993_v3 = vsel %vm5758_vm15, %v1670_v4, %v1671_v58  ;;  %v5759_v59 = vld [vmem:[#allocation18_spill] sm:$0xff]  ;;  %vm5761_vm10 = vmmov %vm5756_vm9  ;;  %v3509_v29 = vld [vmem:[#allocation7 + $0x118] sm:$0xff] }
 0x175   : > { %v4997_v42 = vpack.c.bf16 %v4989_v21, %v4985_v50  ;;  %v3259_v24 = vpack.c.bf16 %v4993_v3, %v4981_v36  ;;  %vm5760_vm3 = vnez %v5759_v59  ;;  %1982 = vmatpush.bf16.msrb.mxu1 %v3509_v29  ;;  %v5765_v59 = vld [vmem:[#allocation16_spill] sm:$0xff]  ;;  %v3528_v29 = vld [vmem:[#allocation7 + $0x1b0] sm:$0xff] }
 0x176   : > { %v1429_v33 = vadd.f32 %v4869_v16, %v1417_v22 }
 0x178   : > { %v5002_v47 = vmax.f32 %v1429_v33, 0.0 }
 0x17a   : > { %v1445_v26 = vrot.slane %v5002_v47, 7  ;;  %v1672_v15 = vrot.slane %v5002_v47, 1  ;;  %v5008_v60 = vpack.c.bf16 %v4875_v1, %v5002_v47  ;;  %v1912_v4 = vpack.c.bf16 %v5002_v47, %v4974_v7  ;;  %v5825_v1 = vld [vmem:[#allocation39_spill] sm:$0xff] }
 0x17c   : > { %3046 = vmatmul.msk.bf16.vlgmr.msra.gmra.mxu1 %vm5760_vm3, %v5008_v60  ;;  %v5017_v16 = vsel %vm5756_vm9, %v1444_v0, %v1445_v26  ;;  %v1453_v17 = vsel %vm5761_vm10, %v1445_v26, %v1438_v57  ;;  %v5027_v20 = vsel %vm5758_vm15, %v1672_v15, %v1665_v53  ;;  %v5031_v22 = vsel %vm5762_vm14, %v1671_v58, %v1672_v15  ;;  %v5763_v53 = vld [vmem:[#allocation17_spill] sm:$0xff]  ;;  %v3537_v58 = vld [vmem:[#allocation7 + $0x1f8] sm:$0xff]  ;;  %v3508_v15 = vld [vmem:[#allocation7 + $0x110] sm:$0xff] }
 0x17d   : > { %v5034_v33 = vpack.c.bf16 %v1453_v17, %v5017_v16  ;;  %v5038_v0 = vpack.c.bf16 %v4898_v35, %v5027_v20  ;;  %v3177_v57 = vpack.c.bf16 %v4904_v12, %v1453_v17  ;;  %v3262_v26 = vpack.c.bf16 %v5027_v20, %v5031_v22  ;;  %v3529_v12 = vld [vmem:[#allocation7 + $0x1b8] sm:$0xff]  ;;  %v3520_v17 = vld [vmem:[#allocation7 + $0x170] sm:$0xff]  ;;  %2320 = vmatpush.bf16.msra.mxu0 %v3537_v58  ;;  %v3507_v58 = vld [vmem:[#allocation7 + $0x108] sm:$0xff] }
 0x17e   : > { %vm5764_vm3 = vnez %v5763_v53  ;;  %vm5766_vm9 = vnez %v5765_v59  ;;  %vm5768_vm10 = vnez %v5621_v6  ;;  %vm5769_vm15 = vnez %v5617_v27  ;;  %2206 = vmatpush.bf16.msra.mxu3 %v3529_v12  ;;  %1983 = vmatpush.bf16.msrb.mxu1 %v3508_v15  ;;  %v3536_v6 = vld [vmem:[#allocation7 + $0x1f0] sm:$0xff]  ;;  %v3519_v27 = vld [vmem:[#allocation7 + $0x168] sm:$0xff]  ;;  %v5774_v12 = vld [vmem:[#allocation28_spill] sm:$0xff] }
 0x17f   : > { %vm5767_vm14 = vmpackc.low %vm5764_vm3, %vm5766_vm9  ;;  %3178 = vmatmul.msk.bf16.vlgmr.msrb.gmra.mxu0 %vm5773_vm8, %v3177_v57  ;;  %2093 = vmatpush.bf16.msra.mxu2 %v3520_v17  ;;  %v3527_v53 = vld [vmem:[#allocation7 + $0x1a8] sm:$0xff]  ;;  %v3526_v57 = vld [vmem:[#allocation7 + $0x1a0] sm:$0xff]  ;;  %vm5775_vm7 = vnez %v5774_v12  ;;  %v5069_v15 = vpack.c.bf16 %v4942_v25, %v4914_v18  ;;  %v3180_v17 = vpack.c.bf16 %v4956_v54, %v4910_v45  ;;  %vm5781_vm3 = vnez %v5650_v28 }
 0x180   : > { %3090 = vmatmul.msk.bf16.vlgmr.msrb.gmra.mxu2 %vm5767_vm14, %v5034_v33  ;;  %vm5770_vm11 = vmpackc.low %vm5768_vm10, %vm5769_vm15  ;;  %v3535_v59 = vld [vmem:[#allocation7 + $0x1e8] sm:$0xff]  ;;  %vm5782_vm9 = vnez %v5646_v55  ;;  %vm5784_vm10 = vnez %v5567_v38  ;;  %v3506_v45 = vld [vmem:[#allocation7 + $0x100] sm:$0xff]  ;;  %v3051_v38 = vpack.c.bf16 %v4934_v2, %v4925_v31 }
 0x181   : > { %3134 = vmatmul.msk.bf16.vlgmr.msrb.gmra.mxu3 %vm5770_vm11, %v5038_v0  ;;  %2321 = vmatpush.bf16.msra.mxu0 %v3536_v6  ;;  %v5778_v6 = vld [vmem:[#allocation24_spill] sm:$0xff]  ;;  %vm5783_vm14 = vmpackc.low %vm5781_vm3, %vm5782_vm9  ;;  %v3516_v54 = vld [vmem:[#allocation7 + $0x150] sm:$0xff]  ;;  %vm5794_vm3 = vnez %v5605_v8  ;;  %v3142_v8 = vpack.c.bf16 %v5031_v22, %v4993_v3 }
 0x182   : > { %2207 = vmatpush.bf16.msra.mxu3 %v3528_v29  ;;  %1984 = vmatpush.bf16.msrb.mxu1 %v3507_v58  ;;  %v5776_v29 = vld [vmem:[#allocation25_spill] sm:$0xff]  ;;  %vm5779_vm11 = vnez %v5778_v6  ;;  %vm5785_vm15 = vmpackc.low %vm5696_vm0, %vm5784_vm10  ;;  %v3532_v28 = vld [vmem:[#allocation7 + $0x1d0] sm:$0xff]  ;;  %v3139_v6 = vpack.c.bf16 %v4981_v36, %v4946_v52 }
 0x183   : > { %2094 = vmatpush.bf16.msra.mxu2 %v3519_v27  ;;  %vm5777_vm8 = vnez %v5776_v29  ;;  %v3517_v27 = vld [vmem:[#allocation7 + $0x158] sm:$0xff]  ;;  %v3515_v55 = vld [vmem:[#allocation7 + $0x148] sm:$0xff]  ;;  %v3522_v12 = vld [vmem:[#allocation7 + $0x180] sm:$0xff] }
 0x184   : > { %vm5780_vm4 = vmpackc.low %vm5777_vm8, %vm5779_vm11  ;;  %v3530_v58 = vld [vmem:[#allocation7 + $0x1c0] sm:$0xff]  ;;  %v3545_v29 = vld [vmem:[#allocation7 + $0x238] sm:$0xff] }
 0x185   : > { %2322 = vmatpush.bf16.msra.mxu0 %v3535_v59  ;;  %v3533_v59 = vld [vmem:[#allocation7 + $0x1d8] sm:$0xff]  ;;  %v5831_v35 = vld [vmem:[#allocation29_spill] sm:$0xff]  ;;  %v5844_v2 = vld [vmem:[#allocation26_spill] sm:$0xff] }
 0x186   : > { %2208 = vmatpush.bf16.msra.mxu3 %v3527_v53  ;;  %v3525_v53 = vld [vmem:[#allocation7 + $0x198] sm:$0xff]  ;;  %1985 = vmatpush.bf16.msrb.mxu1 %v3506_v45  ;;  %v5798_v45 = vld [vmem:[#allocation21_spill] sm:$0xff]  ;;  %v5849_v52 = vld [vmem:[#allocation50_spill] sm:$0xff] }
 0x187   : > { %2095 = vmatpush.bf16.msra.mxu2 %v3518_v48  ;;  %v3524_v48 = vld [vmem:[#allocation7 + $0x190] sm:$0xff]  ;;  %v5846_v25 = vld [vmem:[#allocation27_spill] sm:$0xff]  ;;  %v5858_v3 = vld [vmem:[#allocation41_spill] sm:$0xff] }
 0x188   : > { %v5856_v36 = vld [vmem:[#allocation42_spill] sm:$0xff] }
 0x189   : > { %2323 = vmatpush.bf16.msra.mxu0 %v3534_v5  ;;  %v3531_v5 = vld [vmem:[#allocation7 + $0x1c8] sm:$0xff]  ;;  %v5861_v22 = vld [vmem:[#allocation46_spill] sm:$0xff] }
 0x18a   : > { %2209 = vmatpush.bf16.msra.mxu3 %v3526_v57  ;;  %v3523_v57 = vld [vmem:[#allocation7 + $0x188] sm:$0xff]  ;;  %2434 = vmatpush.bf16.msra.mxu1 %v3545_v29 }
 0x18b   : > { %2096 = vmatpush.bf16.msra.mxu2 %v3517_v27  ;;  %v3183_v27 = vpack.c.bf16 %v4985_v50, %v4950_v63  ;;  %v3544_v63 = vld [vmem:[#allocation7 + $0x230] sm:$0xff]  ;;  %v3054_v50 = vpack.c.bf16 %v4974_v7, %v4967_v10  ;;  %v5853_v10 = vld [vmem:[#allocation37_spill] sm:$0xff] }
 0x18c   : > { %3049 = vmatmul.msk.bf16.gmra.mxu1 %vm5775_vm7, %v5062_v46 }
 0x18d   : > { %2324 = vmatpush.bf16.msra.mxu0 %v3533_v59  ;;  %v5790_v59 = vld [vmem:[#allocation14_spill] sm:$0xff] }
 0x18e   : > { %2210 = vmatpush.bf16.msra.mxu3 %v3525_v53  ;;  %v5788_v53 = vld [vmem:[#allocation15_spill] sm:$0xff]  ;;  %vm5791_vm8 = vnez %v5790_v59  ;;  %2435 = vmatpush.bf16.msra.mxu1 %v3544_v63 }
 0x18f   : > { %3181 = vmatmul.msk.bf16.gmra.mxu0 %vm5785_vm15, %v3180_v17  ;;  %2097 = vmatpush.bf16.msra.mxu2 %v3516_v54  ;;  %v5786_v17 = vld [vmem:[#allocation13_spill] sm:$0xff]  ;;  %vm5789_vm7 = vnez %v5788_v53  ;;  %vm5799_vm15 = vnez %v5798_v45 }
 0x190   : > { %3093 = vmatmul.msk.bf16.gmra.mxu2 %vm5780_vm4, %v4918_v32  ;;  %vm5787_vm0 = vnez %v5786_v17  ;;  %vm5792_vm11 = vmpackc.low %vm5789_vm7, %vm5791_vm8  ;;  %vm5793_vm4 = vnez %v5608_v9  ;;  %v3543_v54 = vld [vmem:[#allocation7 + $0x228] sm:$0xff]  ;;  %v3186_v9 = vpack.c.bf16 %v5017_v16, %v4989_v21  ;;  %vm5805_vm8 = vnez %v5635_v49  ;;  %v3542_v21 = vld [vmem:[#allocation7 + $0x220] sm:$0xff] }
 0x191   : > { %3137 = vmatmul.msk.bf16.gmra.mxu3 %vm5783_vm14, %v5069_v15  ;;  %2325 = vmatpush.bf16.msra.mxu0 %v3532_v28  ;;  %vm5795_vm9 = vmpackc.low %vm5793_vm4, %vm5794_vm3  ;;  %vm5796_vm14 = vnez %v5532_v40  ;;  %v5800_v40 = vld [vmem:[#allocation23_spill] sm:$0xff]  ;;  %v5820_v49 = vld [vmem:[#allocation33_spill] sm:$0xff] }
 0x192   : > { %2211 = vmatpush.bf16.msra.mxu3 %v3524_v48  ;;  %vm5797_vm10 = vmpackc.low %vm5715_vm13, %vm5796_vm14  ;;  %2436 = vmatpush.bf16.msra.mxu1 %v3543_v54  ;;  %vm5801_vm13 = vnez %v5800_v40  ;;  %v3541_v16 = vld [vmem:[#allocation7 + $0x218] sm:$0xff]  ;;  %vm5810_vm14 = vnez %v5611_v44  ;;  %v5818_v44 = vld [vmem:[#allocation34_spill] sm:$0xff] }
 0x193   : > { %2098 = vmatpush.bf16.msra.mxu2 %v3515_v55  ;;  %vm5808_vm3 = vmpackc.low %vm5685_vm6, %vm5684_vm12  ;;  %vm5812_vm6 = vnez %v5658_v39  ;;  %vm5814_vm12 = vnez %v5813_v11  ;;  %v5823_v39 = vld [vmem:[#allocation40_spill] sm:$0xff] }
 0x195   : > { %2326 = vmatpush.bf16.msra.mxu0 %v3531_v5  ;;  %v5866_v5 = vld [vmem:[#allocation49_spill] sm:$0xff] }
 0x196   : > { %2212 = vmatpush.bf16.msra.mxu3 %v3523_v57  ;;  %2437 = vmatpush.bf16.msra.mxu1 %v3542_v21 }
 0x197   : > { %2099 = vmatpush.bf16.msra.mxu2 %v3514_v51 }
 0x199   : > { %2327 = vmatpush.bf16.msra.mxu0 %v3530_v58 }
 0x19a   : > { %2213 = vmatpush.bf16.msra.mxu3 %v3522_v12  ;;  %2438 = vmatpush.bf16.msra.mxu1 %v3541_v16 }
 0x19c   : > { %3052 = vmatmul.msk.bf16.gmra.mxu1 %vm5787_vm0, %v3051_v38  ;;  %vm5803_vm0 = vnez %v5802_v41 }
 0x19d   : > { %vm5804_vm7 = vmpackc.low %vm5801_vm13, %vm5803_vm0  ;;  %vm5817_vm13 = vnez %v5816_v13  ;;  %vm5819_vm0 = vnez %v5818_v44 }
 0x19f   : > { %3184 = vmatmul.msk.bf16.gmra.mxu0 %vm5797_vm10, %v3183_v27 }
 0x1a0   : > { %3096 = vmatmul.msk.bf16.gmra.mxu2 %vm5792_vm11, %v4962_v19  ;;  %vm5806_vm11 = vnez %v5632_v14  ;;  %v3540_v14 = vld [vmem:[#allocation7 + $0x210] sm:$0xff] }
 0x1a1   : > { %3140 = vmatmul.msk.bf16.gmra.mxu3 %vm5795_vm9, %v3139_v6  ;;  %vm5807_vm4 = vmpackc.low %vm5805_vm8, %vm5806_vm11  ;;  %vm5809_vm9 = vnez %v5614_v34  ;;  %2439 = vmatpush.bf16.msra.mxu1 %v3540_v14  ;;  %v3539_v34 = vld [vmem:[#allocation7 + $0x208] sm:$0xff]  ;;  %vm5824_vm11 = vnez %v5823_v39 }
 0x1a2   : > { %vm5811_vm10 = vmpackc.low %vm5809_vm9, %vm5810_vm14  ;;  %vm5829_vm9 = vnez %v5828_v56  ;;  %vm5832_vm14 = vnez %v5831_v35 }
 0x1a5   : > { %2440 = vmatpush.bf16.msra.mxu1 %v3539_v34 }
 0x1ac   : > { %3055 = vmatmul.msk.bf16.gmra.mxu1 %vm5799_vm15, %v3054_v50  ;;  %vm5815_vm15 = vmpackc.low %vm5812_vm6, %vm5814_vm12 }
 0x1af   : > { %3187 = vmatmul.msk.bf16.gmra.mxu0 %vm5808_vm3, %v3186_v9 }
 0x1b0   : > { %3099 = vmatmul.msk.bf16.gmra.mxu2 %vm5804_vm7, %v4997_v42  ;;  %vm5821_vm7 = vnez %v5820_v49 }
 0x1b1   : > { %3143 = vmatmul.msk.bf16.gmra.mxu3 %vm5807_vm4, %v3142_v8  ;;  %vm5822_vm8 = vmpackc.low %vm5819_vm0, %vm5821_vm7  ;;  %vm5826_vm4 = vnez %v5825_v1  ;;  %vm5847_vm0 = vnez %v5846_v25 }
 0x1b2   : > { %vm5827_vm3 = vmpackc.low %vm5824_vm11, %vm5826_vm4  ;;  %vm5854_vm4 = vnez %v5853_v10 }
 0x1bc   : > { %1986 = vmatmul.bf16.vlgmr.msrb.gmra.mxu1 %v1909_v37  ;;  %v3538_v37 = vld [vmem:[#allocation7 + $0x200] sm:$0xff] }
 0x1bd   : > { %2441 = vmatpush.bf16.msra.mxu1 %v3538_v37 }
 0x1bf   : > { %3342 = vmatmul.msk.bf16.vlgmr.msra.gmra.mxu0 %vm5817_vm13, %v5062_v46 }
 0x1c0   : > { %3254 = vmatmul.msk.bf16.vlgmr.msra.gmra.mxu2 %vm5811_vm10, %v3253_v62  ;;  %vm5833_vm10 = vmpackc.low %vm5723_vm1, %vm5832_vm14  ;;  %v5838_v62 = vld [vmem:[#allocation47_spill] sm:$0xff] }
 0x1c1   : > { %3298 = vmatmul.msk.bf16.vlgmr.msra.gmra.mxu3 %vm5815_vm15, %v4918_v32  ;;  %v5835_v32 = vld [vmem:[#allocation12_spill] sm:$0xff]  ;;  %vm5839_vm15 = vnez %v5838_v62 }
 0x1c2   : > { %vm5836_vm6 = vnez %v5835_v32 }
 0x1c3   : > { %vm5837_vm12 = vmpackc.low %vm4732_vm2, %vm5836_vm6  ;;  %vm5845_vm2 = vnez %v5844_v2 }
 0x1c4   : > { %vm5848_vm7 = vmpackc.low %vm5845_vm2, %vm5847_vm0 }
 0x1cc   : > { %1991 = vmatmul.bf16.gmra.mxu1 %v1910_v61  ;;  %v5841_v61 = vld [vmem:[#allocation31_spill] sm:$0xff] }
 0x1cd   : > { %vm5842_vm1 = vnez %v5841_v61 }
 0x1ce   : > { %vm5843_vm13 = vmpackc.low %vm5687_vm5, %vm5842_vm1  ;;  %vm5857_vm5 = vnez %v5856_v36 }
 0x1cf   : > { %3345 = vmatmul.msk.bf16.gmra.mxu0 %vm5829_vm9, %v3051_v38  ;;  %vm5859_vm9 = vnez %v5858_v3  ;;  %v5868_v38 = vld [vmem:[#allocation48_spill] sm:$0xff] }
 0x1d0   : > { %3257 = vmatmul.msk.bf16.gmra.mxu2 %vm5822_vm8, %v3256_v30  ;;  %vm5850_vm8 = vnez %v5849_v52  ;;  %vm5860_vm14 = vmpackc.low %vm5857_vm5, %vm5859_vm9  ;;  %vm5869_vm1 = vnez %v5868_v38 }
 0x1d1   : > { %3301 = vmatmul.msk.bf16.gmra.mxu3 %vm5827_vm3, %v4962_v19  ;;  %v5851_v19 = vld [vmem:[#allocation38_spill] sm:$0xff] }
 0x1d2   : > { %vm5852_vm11 = vnez %v5851_v19 }
 0x1d3   : > { %vm5855_vm3 = vmpackc.low %vm5852_vm11, %vm5854_vm4 }
 0x1dc   : > { %1996 = vmatmul.bf16.gmra.mxu1 %v1911_v23 }
 0x1df   : > { %3348 = vmatmul.msk.bf16.gmra.mxu0 %vm5839_vm15, %v3054_v50  ;;  %vm5867_vm15 = vnez %v5866_v5 }
 0x1e0   : > { %3260 = vmatmul.msk.bf16.gmra.mxu2 %vm5833_vm10, %v3259_v24  ;;  %vm5862_vm10 = vnez %v5861_v22 }
 0x1e1   : > { %3304 = vmatmul.msk.bf16.gmra.mxu3 %vm5837_vm12, %v4997_v42 }
 0x1ec   : > { %2001 = vmatmul.bf16.gmra.mxu1 %v1912_v4 }
 0x1ef   : > { %3351 = vmatmul.msk.bf16.gmra.mxu0 %vm5850_vm8, %v5008_v60 }
 0x1f0   : > { %3263 = vmatmul.msk.bf16.gmra.mxu2 %vm5843_vm13, %v3262_v26  ;;  %vm5870_vm13 = vmpackc.low %vm5867_vm15, %vm5869_vm1 }
 0x1f1   : > { %3307 = vmatmul.msk.bf16.gmra.mxu3 %vm5848_vm7, %v5034_v33  ;;  %v5863_v33 = vld [vmem:[#allocation45_spill] sm:$0xff] }
 0x1f2   : > { %vm5864_vm6 = vnez %v5863_v33 }
 0x1f3   : > { %vm5865_vm12 = vmpackc.low %vm5862_vm10, %vm5864_vm6 }
 0x1f9   : > { %v1568_v30 = vpop.f32.mrf.mxu1 }
 0x1fc   : > { %3386 = vmatmul.msk.bf16.vlgmr.msra.gmra.mxu1 %vm5855_vm3, %v5069_v15  ;;  %v1881_v60 = vpop.f32.mrf.mxu0 }
 0x201   : > { %v1570_v23 = vpop.f32.mrf.mxu1 }
 0x203   : > { %v1645_v42 = vpop.f32.mrf.mxu2 }
 0x204   : > { %v1767_v47 = vpop.f32.mrf.mxu3  ;;  %v1883_v15 = vpop.f32.mrf.mxu0  ;;  %v1646_v34 = vadd.f32 %v1645_v42, %v1568_v30 }
 0x206   : > { %v1787_v49 = vadd.f32 %v1767_v47, %v1646_v34 }
 0x208   : > { %v1901_v43 = vadd.f32 %v1881_v60, %v1787_v49 }
 0x209   : > { %v1573_v7 = vpop.f32.mrf.mxu1 }
 0x20b   : > { %v1647_v4 = vpop.f32.mrf.mxu2 }
 0x20c   : > { %3389 = vmatmul.msk.bf16.gmra.mxu1 %vm5860_vm14, %v3139_v6  ;;  %v1769_v26 = vpop.f32.mrf.mxu3  ;;  %v1886_v57 = vpop.f32.mrf.mxu0  ;;  %v1648_v37 = vadd.f32 %v1647_v4, %v1570_v23  ;;  %v5285_v23 = vld [vmem:[%s5375_s4] ss:$0 sm:$0xff] }
 0x20e   : > { %v1788_v32 = vadd.f32 %v1769_v26, %v1648_v37 }
 0x210   : > { %v1902_v52 = vadd.f32 %v1883_v15, %v1788_v32 }
 0x211   : > { %v5227_v24 = vpop.f32.mrf.mxu1 }
 0x213   : > { %v1650_v48 = vpop.f32.mrf.mxu2 }
 0x214   : > { %v1772_v28 = vpop.f32.mrf.mxu3  ;;  %v5248_v17 = vpop.f32.mrf.mxu0  ;;  %v1651_v25 = vadd.f32 %v1650_v48, %v1573_v7 }
 0x216   : > { %v1789_v10 = vadd.f32 %v1772_v28, %v1651_v25  ;;  %v3638_v28 = vld [vmem:[%s3948_s16] sm:$0xff] }
 0x218   : > { %v1903_v22 = vadd.f32 %v1886_v57, %v1789_v10 }
 0x219   : > { %v5229_v20 = vpop.f32.mrf.mxu1 }
 0x21b   : > { %v1652_v51 = vpop.f32.mrf.mxu2 }
 0x21c   : > { %3392 = vmatmul.msk.bf16.gmra.mxu1 %vm5865_vm12, %v3142_v8  ;;  %v1774_v58 = vpop.f32.mrf.mxu3  ;;  %v5254_v53 = vpop.f32.mrf.mxu0  ;;  %v1653_v4 = vadd.f32 %v1652_v51, %v5227_v24 }
 0x21e   : > { %v1790_v38 = vadd.f32 %v1774_v58, %v1653_v4 }
 0x221   : > { %v5236_v46 = vpop.f32.mrf.mxu1 }
 0x223   : > { %v5250_v29 = vpop.f32.mrf.mxu2 }
 0x224   : > { %v5252_v27 = vpop.f32.mrf.mxu3  ;;  %v1656_v51 = vadd.f32 %v5250_v29, %v5229_v20 }
 0x229   : > { %v5238_v55 = vpop.f32.mrf.mxu1 }
 0x22b   : > { %v5256_v59 = vpop.f32.mrf.mxu2 }
 0x22c   : > { %3395 = vmatmul.msk.bf16.gmra.mxu1 %vm5870_vm13, %v5038_v0  ;;  %v5258_v50 = vpop.f32.mrf.mxu3  ;;  %v5260_v0 = vpop.f32.mrf.mxu0  ;;  %v1658_v20 = vadd.f32 %v5256_v59, %v5236_v46 }
 0x231   : > { %v5246_v12 = vpop.f32.mrf.mxu1 }
 0x233   : > { %v5262_v54 = vpop.f32.mrf.mxu2 }
 0x234   : > { %v5264_v8 = vpop.f32.mrf.mxu3  ;;  %v5266_v40 = vpop.f32.mrf.mxu0 }
 0x239   : > { %v1987_v6 = vpop.f32.mrf.mxu1 }
 0x23a   : > { %v2007_v35 = vadd.f32 %v1987_v6, %v1901_v43 }
 0x23b   : > { %v5268_v41 = vpop.f32.mrf.mxu2 }
 0x23c   : > { %v5272_v16 = vpop.f32.mrf.mxu3  ;;  %v5274_v11 = vpop.f32.mrf.mxu0 }
 0x241   : > { %v1989_v63 = vpop.f32.mrf.mxu1 }
 0x242   : > { %v2008_v30 = vadd.f32 %v1989_v63, %v1902_v52 }
 0x243   : > { %v2101_v13 = vpop.f32.mrf.mxu2 }
 0x244   : > { %v2215_v44 = vpop.f32.mrf.mxu3  ;;  %v2329_v39 = vpop.f32.mrf.mxu0  ;;  %v2121_v62 = vadd.f32 %v2101_v13, %v2007_v35  ;;  %v1791_v35 = vadd.f32 %v5252_v27, %v1656_v51 }
 0x246   : > { %v2235_v19 = vadd.f32 %v2215_v44, %v2121_v62 }
 0x248   : > { %v2349_v3 = vadd.f32 %v2329_v39, %v2235_v19  ;;  %v3640_v19 = vld [vmem:[%s3948_s16 + $0x10] sm:$0xff] }
 0x249   : > { %v1992_v45 = vpop.f32.mrf.mxu1 }
 0x24a   : > { %v2009_v48 = vadd.f32 %v1992_v45, %v1903_v22  ;;  %v1904_v45 = vadd.f32 %v5248_v17, %v1790_v38  ;;  %v1905_v17 = vadd.f32 %v5254_v53, %v1791_v35  ;;  %v1661_v53 = vadd.f32 %v5262_v54, %v5238_v55 }
 0x24b   : > { %v2103_v1 = vpop.f32.mrf.mxu2  ;;  %v1663_v54 = vadd.f32 %v5268_v41, %v5246_v12 }
 0x24c   : > { %v2217_v18 = vpop.f32.mrf.mxu3  ;;  %v2331_v61 = vpop.f32.mrf.mxu0  ;;  %v2122_v36 = vadd.f32 %v2103_v1, %v2008_v30  ;;  %v3639_v1 = vld [vmem:[%s3948_s16 + $0x8] sm:$0xff]  ;;  %v1792_v30 = vadd.f32 %v5258_v50, %v1658_v20  ;;  %v3641_v50 = vld [vmem:[%s3948_s16 + $0x18] sm:$0xff]  ;;  %v3644_v20 = vld [vmem:[%s3948_s16 + $0x30] sm:$0xff] }
 0x24e   : > { %v2236_v7 = vadd.f32 %v2217_v18, %v2122_v36  ;;  %v1906_v59 = vadd.f32 %v5260_v0, %v1792_v30 }
 0x250   : > { %v2350_v13 = vadd.f32 %v2331_v61, %v2236_v7 }
 0x251   : > { %v1994_v9 = vpop.f32.mrf.mxu1 }
 0x252   : > { %v2010_v49 = vadd.f32 %v1994_v9, %v1904_v45 }
 0x253   : > { %v2106_v2 = vpop.f32.mrf.mxu2 }
 0x254   : > { %v2220_v42 = vpop.f32.mrf.mxu3  ;;  %v2334_v33 = vpop.f32.mrf.mxu0  ;;  %v2123_v6 = vadd.f32 %v2106_v2, %v2009_v48 }
 0x256   : > { %v2237_v44 = vadd.f32 %v2220_v42, %v2123_v6 }
 0x258   : > { %v2351_v62 = vadd.f32 %v2334_v33, %v2237_v44 }
 0x259   : > { %v5270_v21 = vpop.f32.mrf.mxu1 }
 0x25a   : > { %v2011_v52 = vadd.f32 %v5270_v21, %v1905_v17 }
 0x25b   : > { %v2108_v15 = vpop.f32.mrf.mxu2 }
 0x25c   : > { %v2222_v57 = vpop.f32.mrf.mxu3  ;;  %v2336_v39 = vpop.f32.mrf.mxu0  ;;  %v2124_v18 = vadd.f32 %v2108_v15, %v2010_v49 }
 0x25e   : > { %v2238_v29 = vadd.f32 %v2222_v57, %v2124_v18 }
 0x260   : > { %v2352_v42 = vadd.f32 %v2336_v39, %v2238_v29 }
 0x261   : > { %v5276_v14 = vpop.f32.mrf.mxu1 }
 0x262   : > { %v2012_v22 = vadd.f32 %v5276_v14, %v1906_v59 }
 0x263   : > { %v2111_v43 = vpop.f32.mrf.mxu2 }
 0x264   : > { %v2225_v25 = vpop.f32.mrf.mxu3  ;;  %v2339_v10 = vpop.f32.mrf.mxu0  ;;  %v2125_v36 = vadd.f32 %v2111_v43, %v2011_v52 }
 0x266   : > { %v2239_v21 = vadd.f32 %v2225_v25, %v2125_v36 }
 0x269   : > { %v5278_v56 = vpop.f32.mrf.mxu1 }
 0x26c   : > { %v2227_v33 = vpop.f32.mrf.mxu3  ;;  %v2341_v55 = vpop.f32.mrf.mxu0 }
 0x271   : > { %v5280_v31 = vpop.f32.mrf.mxu1 }
 0x274   : > { %v2230_v44 = vpop.f32.mrf.mxu3 }
 0x279   : > { %v2443_v47 = vpop.f32.mrf.mxu1 }
 0x27a   : > { %v2463_v60 = vadd.f32 %v2443_v47, %v2349_v3  ;;  %v2113_v47 = vpop.f32.mrf.mxu2 }
 0x27b   : > { %v2126_v15 = vadd.f32 %v2113_v47, %v2012_v22 }
 0x27c   : > { %v2475_v26 = vadd.f32 %v5285_v23, %v2463_v60 }
 0x27d   : > { %v2240_v6 = vadd.f32 %v2227_v33, %v2126_v15 }
 0x27e   : > { %v2483_v5 = vadd.f32 %v3638_v28, %v2475_v26  ;;  %v1793_v26 = vadd.f32 %v5264_v8, %v1661_v53  ;;  %v2353_v28 = vadd.f32 %v2339_v10, %v2239_v21  ;;  %v3642_v8 = vld [vmem:[%s3948_s16 + $0x20] sm:$0xff] }
 0x27f   : > { %v2354_v45 = vadd.f32 %v2341_v55, %v2240_v6 }
 0x280   : > { %v2491_v63 = vmax.f32 %v2483_v5, 0.0  ;;  %v1907_v14 = vadd.f32 %v5266_v40, %v1793_v26 }
 0x281   : > { %v2445_v34 = vpop.f32.mrf.mxu1 }
 0x282   : > { %2499 = vst [vmem:[%s5292_s11] sm:$0xff] %v2491_v63  ;;  %v2464_v24 = vadd.f32 %v2445_v34, %v2350_v13  ;;  %v2116_v0 = vpop.f32.mrf.mxu2  ;;  %v2013_v13 = vadd.f32 %v5278_v56, %v1907_v14  ;;  %v2344_v56 = vpop.f32.mrf.mxu0 }
 0x284   : > { %v2476_v58 = vadd.f32 %v5285_v23, %v2464_v24  ;;  %v1794_v24 = vadd.f32 %v5272_v16, %v1663_v54  ;;  %v2127_v57 = vadd.f32 %v2116_v0, %v2013_v13  ;;  %v3643_v16 = vld [vmem:[%s3948_s16 + $0x28] sm:$0xff] }
 0x286   : > { %v2484_v37 = vadd.f32 %v3639_v1, %v2476_v58  ;;  %v1908_v40 = vadd.f32 %v5274_v11, %v1794_v24  ;;  %v2241_v41 = vadd.f32 %v2230_v44, %v2127_v57  ;;  %v2232_v11 = vpop.f32.mrf.mxu3 }
 0x288   : > { %v2492_v32 = vmax.f32 %v2484_v37, 0.0  ;;  %v2014_v1 = vadd.f32 %v5280_v31, %v1908_v40  ;;  %v2355_v18 = vadd.f32 %v2344_v56, %v2241_v41 }
 0x289   : > { %v2448_v61 = vpop.f32.mrf.mxu1 }
 0x28a   : > { %2500 = vst [vmem:[%s5292_s11 + $0x8] sm:$0xff] %v2492_v32  ;;  %v2465_v2 = vadd.f32 %v2448_v61, %v2351_v62  ;;  %v2118_v39 = vpop.f32.mrf.mxu2  ;;  %v2346_v31 = vpop.f32.mrf.mxu0 }
 0x28b   : > { %v2128_v43 = vadd.f32 %v2118_v39, %v2014_v1 }
 0x28c   : > { %v2477_v9 = vadd.f32 %v5285_v23, %v2465_v2 }
 0x28d   : > { %v2242_v61 = vadd.f32 %v2232_v11, %v2128_v43 }
 0x28e   : > { %v2485_v27 = vadd.f32 %v3640_v19, %v2477_v9 }
 0x28f   : > { %v2356_v9 = vadd.f32 %v2346_v31, %v2242_v61 }
 0x290   : > { %v2493_v3 = vmax.f32 %v2485_v27, 0.0  ;;  %v3645_v27 = vld [vmem:[%s3948_s16 + $0x38] sm:$0xff] }
 0x291   : > { %v2450_v60 = vpop.f32.mrf.mxu1 }
 0x292   : > { %2501 = vst [vmem:[%s5292_s11 + $0x10] sm:$0xff] %v2493_v3  ;;  %v2466_v46 = vadd.f32 %v2450_v60, %v2352_v42 }
 0x294   : > { %v2478_v4 = vadd.f32 %v5285_v23, %v2466_v46 }
 0x296   : > { %v2486_v7 = vadd.f32 %v3641_v50, %v2478_v4 }
 0x298   : > { %v2494_v48 = vmax.f32 %v2486_v7, 0.0 }
 0x299   : > { %v2453_v5 = vpop.f32.mrf.mxu1 }
 0x29a   : > { %2502 = vst [vmem:[%s5292_s11 + $0x18] sm:$0xff] %v2494_v48  ;;  %v2467_v38 = vadd.f32 %v2453_v5, %v2353_v28 }
 0x29c   : > { %v2479_v63 = vadd.f32 %v5285_v23, %v2467_v38 }
 0x29e   : > { %v2487_v34 = vadd.f32 %v3642_v8, %v2479_v63 }
 0x2a0   : > { %v2495_v51 = vmax.f32 %v2487_v34, 0.0 }
 0x2a1   : > { %v2455_v58 = vpop.f32.mrf.mxu1 }
 0x2a2   : > { %2503 = vst [vmem:[%s5292_s11 + $0x20] sm:$0xff] %v2495_v51  ;;  %v2468_v12 = vadd.f32 %v2455_v58, %v2354_v45 }
 0x2a4   : > { %v2480_v49 = vadd.f32 %v5285_v23, %v2468_v12 }
 0x2a6   : > { %v2488_v37 = vadd.f32 %v3643_v16, %v2480_v49 }
 0x2a8   : > { %v2496_v35 = vmax.f32 %v2488_v37, 0.0 }
 0x2a9   : > { %v2458_v32 = vpop.f32.mrf.mxu1 }
 0x2aa   : > { %2504 = vst [vmem:[%s5292_s11 + $0x28] sm:$0xff] %v2496_v35  ;;  %v2469_v62 = vadd.f32 %v2458_v32, %v2355_v18 }
 0x2ac   : > { %v2481_v2 = vadd.f32 %v5285_v23, %v2469_v62 }
 0x2ae   : > { %v2489_v17 = vadd.f32 %v3644_v20, %v2481_v2 }
 0x2b0   : > { %v2497_v29 = vmax.f32 %v2489_v17, 0.0 }
 0x2b1   : > { %v2460_v25 = vpop.f32.mrf.mxu1 }
 0x2b2   : > { %2505 = vst [vmem:[%s5292_s11 + $0x30] sm:$0xff] %v2497_v29  ;;  %v2470_v52 = vadd.f32 %v2460_v25, %v2356_v9 }
 0x2b4   : > { %v2482_v19 = vadd.f32 %v5285_v23, %v2470_v52 }
 0x2b6   : > { %v2490_v30 = vadd.f32 %v3645_v27, %v2482_v19 }
 0x2b8   : > { %v2498_v10 = vmax.f32 %v2490_v30, 0.0 }
 0x2ba   : > { %2506 = vst [vmem:[%s5292_s11 + $0x38] sm:$0xff] %v2498_v10 }
 0x2bb   : > { %3763 = shalt.err (!%p3760_p10)
}
 0x2bc   : > { %s3814_s8 = smov 128   ;;  %s3815_s16 = smov 8  }
 0x2bd   : > { %3573 = dma.vmem_to_hbm [thread:$0]  (%p3912_p3), %s2521_s6, 1024, %s2523_s26, %s2508_s22, %s3814_s8, %s3814_s8, %s3815_s16  }
 0x2be PF: > { %s2537_s11 = sand.u32 1, %s3794_s18   ;;  %p5871_p12 = scmp.ge.s32.totalorder %s3806_s21, 2 }
 0x2bf   : > { %s2538_s12 = scalar_lea.sflag [#allocation4], %s2537_s11 }
 0x2c0   : > { %p3587_p13 = pnand %p5871_p12, %p3881_p6 }
 0x2c2   : > { %p3588_p0 = pneg %p3587_p13 }
 0x2c4   : > { %3789 = dma.done.wait (%p3588_p0), %s2538_s12, 1024  }
 0x2c5   : > { %3791 = vsyncadd (%p3588_p0), %s2538_s12, 4294966272  ;;  %p19_p5 = scmp.ge.s32.totalorder %s3902_s14, 4   ;;  %s5872_s18 = smov %s3798_s19 }
 0x2c6   : > { %s5873_s19 = smov %s3802_s20  ;;  %s5874_s20 = smov %s3918_s23 }
 0x2c7   : > { %s5875_s21 = smov %s3902_s14  ;;  %21 = sbr.rel (!%p19_p5) target bundleno = 6 (0x6), region = 109 }
 0x2cc   :  { %2544 = vsyncpa [#allocation3], 1 }
 0x2cd   :  { %2546 = vsyncpa [#allocation3 + $0x1], 1 }
 0x2ce   :  { %2547 = vsyncpa [#allocation6], 1 }
 0x2cf   :  { %2548 = vsyncpa [#allocation4], 1 }
 0x2d0   :  { %2550 = vsyncpa [#allocation4 + $0x1], 1 }

</bundles_post_ra>
